<compile_context>
chip_gen: v7x
topology: tpu7x:2x2x1
jax: 0.10.0
libtpu: 0.0.40
codegen_flags: <defaults>
</compile_context>

<pallas_src>
import math
from functools import partial

import jax
import jax.numpy as jnp
from jax import lax
from jax.experimental import pallas as pl
from jax.experimental.pallas import tpu as pltpu


# ----------------------------- in-kernel helpers --------------------------- #

def _layer_norm(x, gamma, beta, eps=1e-5):
    mean = jnp.mean(x, axis=-1, keepdims=True)
    var = jnp.mean(jnp.square(x - mean), axis=-1, keepdims=True)
    return (x - mean) * lax.rsqrt(var + eps) * gamma + beta


def _softmax_last(scores):
    # fp32 in / fp32 out; exact denominator so exported maps sum to 1.
    m = jnp.max(scores, axis=-1, keepdims=True)
    e = jnp.exp(scores - m)
    return e / jnp.sum(e, axis=-1, keepdims=True)


# ------------------------------- fused kernel ------------------------------ #
#
# Grid: (batch_tiles [parallel], num_layers [arbitrary]).
# Activation state lives in a VMEM scratch across the layer axis; weights are
# streamed per layer by the BlockSpec pipeline (4 slabs / layer).

def decoder_stack_kernel(
    x_ref, enc_ref,                       # activations (constant over layer axis)
    w_attn_ref, w_ff1_ref, w_ff2_ref, vec_ref,   # packed per-layer params
    y_ref, sa_ref, ca_ref,                # outputs (written on last layer only)
    x_state, mask_scr,                    # VMEM scratch
):
    layer = pl.program_id(1)
    n_layers = pl.num_programs(1)

    BT, S, D = x_state.shape
    T = enc_ref.shape[1]
    FF = w_ff1_ref.shape[2]

    @pl.when(layer == 0)
    def _():
        x_state[...] = x_ref[...]
        # additive causal mask, computed once per batch tile
        row = lax.broadcasted_iota(jnp.int32, (S, S), 0)
        col = lax.broadcasted_iota(jnp.int32, (S, S), 1)
        mask_scr[...] = jnp.where(col <= row, 0.0, -1e30).astype(jnp.float32)

    # ---- packed per-layer parameters -------------------------------------- #
    # attention slab columns: [Wq*s | Wk | Wv | cWk | cWv | Wo | cWq*s | cWo]
    w_qkv = w_attn_ref[0, :, 0:3 * D]          # (D, 3D) bf16
    w_ckv = w_attn_ref[0, :, 3 * D:5 * D]      # (D, 2D) bf16
    w_o   = w_attn_ref[0, :, 5 * D:6 * D]      # (D, D)  bf16
    w_cq  = w_attn_ref[0, :, 6 * D:7 * D]      # (D, D)  bf16
    w_co  = w_attn_ref[0, :, 7 * D:8 * D]      # (D, D)  bf16
    w1 = w_ff1_ref[0]                          # (D, FF) bf16
    w2 = w_ff2_ref[0]                          # (FF, D) bf16

    vecs = vec_ref[0]                          # (16, FF) fp32
    bq, bk, bv, bo = vecs[0, :D], vecs[1, :D], vecs[2, :D], vecs[3, :D]
    cbq, cbk, cbv, cbo = vecs[4, :D], vecs[5, :D], vecs[6, :D], vecs[7, :D]
    g1, be1 = vecs[8, :D], vecs[9, :D]
    g2, be2 = vecs[10, :D], vecs[11, :D]
    g3, be3 = vecs[12, :D], vecs[13, :D]
    b2 = vecs[14, :D]
    b1 = vecs[15, :]                           # (FF,)

    x32 = x_state[...]                         # (BT, S, D) fp32
    x2d = x32.reshape(BT * S, D)
    x16 = x2d.astype(jnp.bfloat16)
    enc16 = enc_ref[...].reshape(BT * T, D)    # already bf16

    # ---- masked (causal) self-attention (fused QKV projection) ------------ #
    qkv = jnp.dot(x16, w_qkv, preferred_element_type=jnp.float32)   # (BT*S, 3D)
    q = (qkv[:, 0:D] + bq).reshape(BT, S, D).astype(jnp.bfloat16)   # scale folded in
    k = (qkv[:, D:2 * D] + bk).reshape(BT, S, D).astype(jnp.bfloat16)
    v = (qkv[:, 2 * D:3 * D] + bv).reshape(BT, S, D).astype(jnp.bfloat16)

    scores = lax.dot_general(q, k, (((2,), (2,)), ((0,), (0,))),
                             preferred_element_type=jnp.float32)    # (BT,S,S)
    scores = scores + mask_scr[...][None, :, :]
    attn = _softmax_last(scores)

    ctx = lax.dot_general(attn.astype(jnp.bfloat16), v,
                          (((2,), (1,)), ((0,), (0,))),
                          preferred_element_type=jnp.float32)        # (BT,S,D)
    sa_out = jnp.dot(ctx.reshape(BT * S, D).astype(jnp.bfloat16), w_o,
                     preferred_element_type=jnp.float32) + bo

    x1 = _layer_norm(x2d + sa_out, g1, be1)                          # (BT*S,D) fp32

    # ---- cross-attention (Q from decoder, fused K|V from encoder) --------- #
    qc = jnp.dot(x1.astype(jnp.bfloat16), w_cq,
                 preferred_element_type=jnp.float32) + cbq           # scale folded in
    qc = qc.reshape(BT, S, D).astype(jnp.bfloat16)
    kv = jnp.dot(enc16, w_ckv, preferred_element_type=jnp.float32)   # (BT*T, 2D)
    kc = (kv[:, 0:D] + cbk).reshape(BT, T, D).astype(jnp.bfloat16)
    vc = (kv[:, D:2 * D] + cbv).reshape(BT, T, D).astype(jnp.bfloat16)

    cscores = lax.dot_general(qc, kc, (((2,), (2,)), ((0,), (0,))),
                              preferred_element_type=jnp.float32)    # (BT,S,T)
    cattn = _softmax_last(cscores)
    cctx = lax.dot_general(cattn.astype(jnp.bfloat16), vc,
                           (((2,), (1,)), ((0,), (0,))),
                           preferred_element_type=jnp.float32)
    ca_out = jnp.dot(cctx.reshape(BT * S, D).astype(jnp.bfloat16), w_co,
                     preferred_element_type=jnp.float32) + cbo

    x2 = _layer_norm(x1 + ca_out, g2, be2)

    # ---- feed-forward (ReLU MLP, hidden = ff_hidden_ratio * D) ------------ #
    h = jnp.dot(x2.astype(jnp.bfloat16), w1,
                preferred_element_type=jnp.float32) + b1
    h = jnp.maximum(h, 0.0)
    ff = jnp.dot(h.astype(jnp.bfloat16), w2,
                 preferred_element_type=jnp.float32) + b2

    out = _layer_norm(x2 + ff, g3, be3).reshape(BT, S, D)

    x_state[...] = out                         # next layer reads this

    @pl.when(layer == n_layers - 1)
    def _():
        y_ref[...] = out                       # only last layer hits HBM
        sa_ref[...] = attn
        ca_ref[...] = cattn


# --------------------------- wrapper / glue -------------------------------- #

def _vmem_limit_bytes(BT, S, T, D, FF):
    act = 4 * (3 * BT * S * D + BT * S * S + BT * S * T + S * S) + 2 * BT * T * D
    wgt = 2 * (8 * D * D + D * FF + FF * D) + 4 * 16 * FF
    est = act + 3 * wgt                        # weights double-buffered + headroom
    return int(min(max(2 * est, 32 * 1024 * 1024), 64 * 1024 * 1024))


@partial(jax.jit, static_argnames=("batch_tile",))
def decoder_stack_call(x, enc_bf16, w_attn, w_ff1, w_ff2, vecs, *, batch_tile=None):
    B, S, D = x.shape
    T = enc_bf16.shape[1]
    FF = w_ff1.shape[2]
    L = w_attn.shape[0]

    BT = B if batch_tile is None else batch_tile
    assert B % BT == 0
    nb = B // BT

    in_specs = [
        pl.BlockSpec((BT, S, D), lambda b, l: (b, 0, 0)),   # x (fp32)
        pl.BlockSpec((BT, T, D), lambda b, l: (b, 0, 0)),   # encoder_out (bf16)
        pl.BlockSpec((1, D, 8 * D), lambda b, l: (l, 0, 0)),  # packed attn weights
        pl.BlockSpec((1, D, FF),   lambda b, l: (l, 0, 0)),   # FF up
        pl.BlockSpec((1, FF, D),   lambda b, l: (l, 0, 0)),   # FF down
        pl.BlockSpec((1, 16, FF),  lambda b, l: (l, 0, 0)),   # biases + LN params
    ]
    out_specs = [
        pl.BlockSpec((BT, S, D), lambda b, l: (b, 0, 0)),   # decoder output
        pl.BlockSpec((BT, S, S), lambda b, l: (b, 0, 0)),   # last-layer self-attn
        pl.BlockSpec((BT, S, T), lambda b, l: (b, 0, 0)),   # last-layer cross-attn
    ]
    out_shape = (
        jax.ShapeDtypeStruct((B, S, D), jnp.float32),
        jax.ShapeDtypeStruct((B, S, S), jnp.float32),
        jax.ShapeDtypeStruct((B, S, T), jnp.float32),
    )

    return pl.pallas_call(
        decoder_stack_kernel,
        out_shape=out_shape,
        grid_spec=pltpu.PrefetchScalarGridSpec(
            num_scalar_prefetch=0,
            grid=(nb, L),
            in_specs=in_specs,
            out_specs=out_specs,
            scratch_shapes=[
                pltpu.VMEM((BT, S, D), jnp.float32),   # resident activations
                pltpu.VMEM((S, S), jnp.float32),       # additive causal mask
            ],
        ),
        compiler_params=pltpu.CompilerParams(
            dimension_semantics=("parallel", "arbitrary"),
            vmem_limit_bytes=_vmem_limit_bytes(BT, S, T, D, FF),
        ),
    )(x, enc_bf16, w_attn, w_ff1, w_ff2, vecs)


# --------------------------- parameter packing ------------------------------ #

_PARAM_ORDER = (
    "wq", "bq", "wk", "bk", "wv", "bv", "wo", "bo",
    "g1", "be1",
    "cwq", "cbq", "cwk", "cbk", "cwv", "cbv", "cwo", "cbo",
    "g2", "be2",
    "w1", "b1", "w2", "b2",
    "g3", "be3",
)


def pack_params(stacked, d_model, ff_hidden):
    """Pack the 26 per-layer tensors into 4 slabs; fold 1/sqrt(D) into Q proj."""
    D, FF = d_model, ff_hidden
    scale = 1.0 / math.sqrt(D)

    def w(name, s=1.0):
        return stacked[name].astype(jnp.float32) * s

    # (L, D, 8D): [Wq*s | Wk | Wv | cWk | cWv | Wo | cWq*s | cWo]
    w_attn = jnp.concatenate(
        [w("wq", scale), w("wk"), w("wv"),
         w("cwk"), w("cwv"),
         w("wo"), w("cwq", scale), w("cwo")],
        axis=-1).astype(jnp.bfloat16)

    w_ff1 = stacked["w1"].astype(jnp.bfloat16)    # (L, D, FF)
    w_ff2 = stacked["w2"].astype(jnp.bfloat16)    # (L, FF, D)

    def vrow(name, s=1.0):                        # (L, 1, D) fp32
        return stacked[name].astype(jnp.float32) * s

    rows_d = jnp.concatenate(
        [vrow("bq", scale), vrow("bk"), vrow("bv"), vrow("bo"),
         vrow("cbq", scale), vrow("cbk"), vrow("cbv"), vrow("cbo"),
         vrow("g1"), vrow("be1"), vrow("g2"), vrow("be2"),
         vrow("g3"), vrow("be3"), vrow("b2")],
        axis=1)                                   # (L, 15, D)
    L = rows_d.shape[0]
    rows_d = jnp.concatenate(
        [rows_d, jnp.zeros((L, 15, FF - D), jnp.float32)], axis=-1)  # (L, 15, FF)
    b1_row = stacked["b1"].astype(jnp.float32)    # (L, 1, FF)
    vecs = jnp.concatenate([rows_d, b1_row], axis=1)                 # (L, 16, FF)

    return dict(w_attn=w_attn, w_ff1=w_ff1, w_ff2=w_ff2, vecs=vecs)


def sinusoidal_positional_encoding(seq_len, d_model):
    pos = jnp.arange(seq_len, dtype=jnp.float32)[:, None]
    i = jnp.arange(0, d_model, 2, dtype=jnp.float32)
    div = jnp.exp(-math.log(10000.0) * i / d_model)
    pe = jnp.zeros((seq_len, d_model), jnp.float32)
    pe = pe.at[:, 0::2].set(jnp.sin(pos * div))
    pe = pe.at[:, 1::2].set(jnp.cos(pos * div))
    return pe


def init_block_params(key, d_model, ff_hidden):
    ks = jax.random.split(key, 10)
    std = 0.02

    def lin(k, din, dout):
        w = (std * jax.random.normal(k, (din, dout), jnp.float32)).astype(jnp.bfloat16)
        b = jnp.zeros((1, dout), jnp.float32)
        return w, b

    wq, bq = lin(ks[0], d_model, d_model)
    wk, bk = lin(ks[1], d_model, d_model)
    wv, bv = lin(ks[2], d_model, d_model)
    wo, bo = lin(ks[3], d_model, d_model)
    cwq, cbq = lin(ks[4], d_model, d_model)
    cwk, cbk = lin(ks[5], d_model, d_model)
    cwv, cbv = lin(ks[6], d_model, d_model)
    cwo, cbo = lin(ks[7], d_model, d_model)
    w1, b1 = lin(ks[8], d_model, ff_hidden)
    w2, b2 = lin(ks[9], ff_hidden, d_model)

    ones = jnp.ones((1, d_model), jnp.float32)
    zeros = jnp.zeros((1, d_model), jnp.float32)
    return dict(
        wq=wq, bq=bq, wk=wk, bk=bk, wv=wv, bv=bv, wo=wo, bo=bo,
        g1=ones, be1=zeros,
        cwq=cwq, cbq=cbq, cwk=cwk, cbk=cbk, cwv=cwv, cbv=cbv, cwo=cwo, cbo=cbo,
        g2=ones, be2=zeros,
        w1=w1, b1=b1, w2=w2, b2=b2,
        g3=ones, be3=zeros,
    )


def init_stacked_params(key, num_blocks, d_model, ff_hidden):
    keys = jax.random.split(key, num_blocks)
    per_layer = [init_block_params(k, d_model, ff_hidden) for k in keys]
    return {name: jnp.stack([p[name] for p in per_layer]) for name in _PARAM_ORDER}


def decoder_forward(x, encoder_out, packed, pe, *, batch_tile=None):
    # positional encoding (elementwise glue kept in plain JAX)
    x = x + pe[None, :, :]
    enc_bf16 = encoder_out.astype(jnp.bfloat16)   # half the DMA bytes
    y, sa, ca = decoder_stack_call(
        x, enc_bf16, packed["w_attn"], packed["w_ff1"], packed["w_ff2"],
        packed["vecs"], batch_tile=batch_tile)
    # PyTorch loop overwrites `attention` each block -> only last block's maps;
    # match (B, n_heads, S, S/T) with n_heads = 1.
    attention = {
        "self_attention": sa[:, None, :, :],
        "cross_attention": ca[:, None, :, :],
    }
    return y, attention


# --------------------------- pure-JAX reference ----------------------------- #

def _ref_layer_norm(x, g, b, eps=1e-5):
    mean = jnp.mean(x, -1, keepdims=True)
    var = jnp.mean((x - mean) ** 2, -1, keepdims=True)
    return (x - mean) / jnp.sqrt(var + eps) * g + b


def reference_decoder(x, enc, stacked, pe):
    x = x + pe[None]
    B, S, D = x.shape
    scale = 1.0 / math.sqrt(D)
    mask = jnp.tril(jnp.ones((S, S), bool))
    num_layers = stacked["wq"].shape[0]
    attention = {}
    for l in range(num_layers):
        p = {name: stacked[name][l].astype(jnp.float32) for name in stacked}
        lin = lambda inp, w, b: inp @ w + b
        q = lin(x, p["wq"], p["bq"])
        k = lin(x, p["wk"], p["bk"])
        v = lin(x, p["wv"], p["bv"])
        s = jnp.einsum("bqd,bkd->bqk", q, k) * scale
        s = jnp.where(mask[None], s, -1e30)
        a = jax.nn.softmax(s, axis=-1)
        sa = lin(jnp.einsum("bqk,bkd->bqd", a, v), p["wo"], p["bo"])
        x1 = _ref_layer_norm(x + sa, p["g1"], p["be1"])

        qc = lin(x1, p["cwq"], p["cbq"])
        kc = lin(enc, p["cwk"], p["cbk"])
        vc = lin(enc, p["cwv"], p["cbv"])
        cs = jnp.einsum("bqd,bkd->bqk", qc, kc) * scale
        ca = jax.nn.softmax(cs, axis=-1)
        co = lin(jnp.einsum("bqk,bkd->bqd", ca, vc), p["cwo"], p["cbo"])
        x2 = _ref_layer_norm(x1 + co, p["g2"], p["be2"])

        h = jnp.maximum(lin(x2, p["w1"], p["b1"]), 0.0)
        ff = lin(h, p["w2"], p["b2"])
        x = _ref_layer_norm(x2 + ff, p["g3"], p["be3"])
        attention = {"self_attention": a[:, None], "cross_attention": ca[:, None]}
    return x, attention


# ------------------------------ main ---------------------------------------- #

if __name__ == "__main__":
    B, S, T, D = 2, 8, 8, 128          # batch, dec seq, enc seq, d_model (lane-dense)
    NUM_BLOCKS, FF_RATIO = 2, 4
    FF_HIDDEN = FF_RATIO * D

    root = jax.random.PRNGKey(0)
    kx, kenc, kparams = jax.random.split(root, 3)

    x = jax.random.normal(kx, (B, S, D), jnp.float32)
    encoder_out = jax.random.normal(kenc, (B, T, D), jnp.float32)

    stacked = init_stacked_params(kparams, NUM_BLOCKS, D, FF_HIDDEN)
    packed = pack_params(stacked, D, FF_HIDDEN)
    pe = sinusoidal_positional_encoding(S, D)

    # TODO(synk): on v7x set batch_tile=B//2 to spread the batch axis across
    # both TensorCores; kept at full batch here for fuller MXU rows on v5e/v6e.
    y, attn = decoder_forward(x, encoder_out, packed, pe)
    jax.block_until_ready((y, attn))

    # reference (fp32, same bf16-quantized weights) for correctness
    y_ref, attn_ref = reference_decoder(x, encoder_out, stacked, pe)

    assert y.shape == (B, S, D)
    assert attn["self_attention"].shape == (B, 1, S, S)
    assert attn["cross_attention"].shape == (B, 1, S, T)
    assert bool(jnp.all(jnp.isfinite(y)))
    # exact softmax denominator -> rows sum to 1 tightly
    assert jnp.allclose(jnp.sum(attn["self_attention"], -1), 1.0, atol=1e-3)
    assert jnp.allclose(jnp.sum(attn["cross_attention"], -1), 1.0, atol=1e-3)
    # bf16 matmuls vs. fp32 reference => loose tolerances
    assert jnp.allclose(y, y_ref, atol=5e-2, rtol=0.0)
    assert jnp.allclose(attn["self_attention"], attn_ref["self_attention"], atol=1e-2)
    assert jnp.allclose(attn["cross_attention"], attn_ref["cross_attention"], atol=1e-2)

    print("KERNEL_OK")
</pallas_src>

<mosaic_0001>
module attributes {stable_mosaic.version = 11 : i64} {
  func.func @decoder_stack_kernel(%arg0: i32, %arg1: i32, %arg2: memref<2x8x128xf32, #tpu.memory_space<vmem>>, %arg3: memref<2x8x128xbf16, #tpu.memory_space<vmem>>, %arg4: memref<1x128x1024xbf16, #tpu.memory_space<vmem>>, %arg5: memref<1x128x512xbf16, #tpu.memory_space<vmem>>, %arg6: memref<1x512x128xbf16, #tpu.memory_space<vmem>>, %arg7: memref<1x16x512xf32, #tpu.memory_space<vmem>>, %arg8: memref<2x8x128xf32, #tpu.memory_space<vmem>>, %arg9: memref<2x8x8xf32, #tpu.memory_space<vmem>>, %arg10: memref<2x8x8xf32, #tpu.memory_space<vmem>>, %arg11: memref<2x8x128xf32, #tpu.memory_space<vmem>>, %arg12: memref<8x8xf32, #tpu.memory_space<vmem>>) attributes {dimension_semantics = [#tpu.dimension_semantics<parallel>, #tpu.dimension_semantics<arbitrary>], iteration_bounds = array<i64: 1, 2>, scalar_prefetch = 0 : i64, scratch_operands = 2 : i64, tpu.core_type = #tpu.core_type<tc>, window_params = [{transform_indices = @transform_0, window_bounds = array<i64: 2, 8, 128>}, {transform_indices = @transform_1, window_bounds = array<i64: 2, 8, 128>}, {transform_indices = @transform_2, window_bounds = array<i64: 1, 128, 1024>}, {transform_indices = @transform_3, window_bounds = array<i64: 1, 128, 512>}, {transform_indices = @transform_4, window_bounds = array<i64: 1, 512, 128>}, {transform_indices = @transform_5, window_bounds = array<i64: 1, 16, 512>}, {transform_indices = @transform_6, window_bounds = array<i64: 2, 8, 128>}, {transform_indices = @transform_7, window_bounds = array<i64: 2, 8, 8>}, {transform_indices = @transform_8, window_bounds = array<i64: 2, 8, 8>}]} {
    %c0_i32 = arith.constant 0 : i32
    %0 = arith.cmpi eq, %arg1, %c0_i32 : i32
    %1 = arith.extui %0 : i1 to i32
    %c0_i32_0 = arith.constant 0 : i32
    %2 = arith.cmpi ne, %1, %c0_i32_0 : i32
    scf.if %2 {
      %c0_62 = arith.constant 0 : index
      %c0_63 = arith.constant 0 : index
      %c0_64 = arith.constant 0 : index
      %227 = vector.load %arg2[%c0_62, %c0_63, %c0_64] : memref<2x8x128xf32, #tpu.memory_space<vmem>>, vector<2x8x128xf32>
      %c0_65 = arith.constant 0 : index
      %c0_66 = arith.constant 0 : index
      %c0_67 = arith.constant 0 : index
      %228 = vector.load %arg11[%c0_65, %c0_66, %c0_67] : memref<2x8x128xf32, #tpu.memory_space<vmem>>, vector<2x8x128xf32>
      tpu.vector_store %arg11[%c0_65, %c0_66, %c0_67], %227 {strides = array<i32>} : memref<2x8x128xf32, #tpu.memory_space<vmem>>, vector<2x8x128xf32>,
      %229 = tpu.iota {dimensions = array<i32: 0>} : vector<8x8xi32>
      %230 = tpu.iota {dimensions = array<i32: 1>} : vector<8x8xi32>
      %231 = arith.cmpi sle, %230, %229 : vector<8x8xi32>
      %cst_68 = arith.constant 0.000000e+00 : f32
      %cst_69 = arith.constant -1.000000e+30 : f32
      %232 = vector.broadcast %cst_68 : f32 to vector<8x8xf32>
      %233 = vector.broadcast %cst_69 : f32 to vector<8x8xf32>
      %234 = arith.select %231, %232, %233 : vector<8x8xi1>, vector<8x8xf32>
      %c0_70 = arith.constant 0 : index
      %c0_71 = arith.constant 0 : index
      %235 = vector.load %arg12[%c0_70, %c0_71] : memref<8x8xf32, #tpu.memory_space<vmem>>, vector<8x8xf32>
      tpu.vector_store %arg12[%c0_70, %c0_71], %234 {strides = array<i32>} : memref<8x8xf32, #tpu.memory_space<vmem>>, vector<8x8xf32>,
    } else {
    }
    %c0 = arith.constant 0 : index
    %c0_1 = arith.constant 0 : index
    %c0_2 = arith.constant 0 : index
    %3 = vector.load %arg4[%c0, %c0_1, %c0_2] : memref<1x128x1024xbf16, #tpu.memory_space<vmem>>, vector<1x128x384xbf16>
    %4 = vector.shape_cast %3 : vector<1x128x384xbf16> to vector<128x384xbf16>
    %c0_3 = arith.constant 0 : index
    %c0_4 = arith.constant 0 : index
    %c384 = arith.constant 384 : index
    %5 = vector.load %arg4[%c0_3, %c0_4, %c384] : memref<1x128x1024xbf16, #tpu.memory_space<vmem>>, vector<1x128x256xbf16>
    %6 = vector.shape_cast %5 : vector<1x128x256xbf16> to vector<128x256xbf16>
    %c0_5 = arith.constant 0 : index
    %c0_6 = arith.constant 0 : index
    %c640 = arith.constant 640 : index
    %7 = vector.load %arg4[%c0_5, %c0_6, %c640] : memref<1x128x1024xbf16, #tpu.memory_space<vmem>>, vector<1x128x128xbf16>
    %8 = vector.shape_cast %7 : vector<1x128x128xbf16> to vector<128x128xbf16>
    %c0_7 = arith.constant 0 : index
    %c0_8 = arith.constant 0 : index
    %c768 = arith.constant 768 : index
    %9 = vector.load %arg4[%c0_7, %c0_8, %c768] : memref<1x128x1024xbf16, #tpu.memory_space<vmem>>, vector<1x128x128xbf16>
    %10 = vector.shape_cast %9 : vector<1x128x128xbf16> to vector<128x128xbf16>
    %c0_9 = arith.constant 0 : index
    %c0_10 = arith.constant 0 : index
    %c896 = arith.constant 896 : index
    %11 = vector.load %arg4[%c0_9, %c0_10, %c896] : memref<1x128x1024xbf16, #tpu.memory_space<vmem>>, vector<1x128x128xbf16>
    %12 = vector.shape_cast %11 : vector<1x128x128xbf16> to vector<128x128xbf16>
    %c0_11 = arith.constant 0 : index
    %c0_12 = arith.constant 0 : index
    %c0_13 = arith.constant 0 : index
    %13 = vector.load %arg5[%c0_11, %c0_12, %c0_13] : memref<1x128x512xbf16, #tpu.memory_space<vmem>>, vector<1x128x512xbf16>
    %14 = vector.shape_cast %13 : vector<1x128x512xbf16> to vector<128x512xbf16>
    %c0_14 = arith.constant 0 : index
    %c0_15 = arith.constant 0 : index
    %c0_16 = arith.constant 0 : index
    %15 = vector.load %arg6[%c0_14, %c0_15, %c0_16] : memref<1x512x128xbf16, #tpu.memory_space<vmem>>, vector<1x512x128xbf16>
    %16 = vector.shape_cast %15 : vector<1x512x128xbf16> to vector<512x128xbf16>
    %c0_17 = arith.constant 0 : index
    %c0_18 = arith.constant 0 : index
    %c0_19 = arith.constant 0 : index
    %17 = vector.load %arg7[%c0_17, %c0_18, %c0_19] : memref<1x16x512xf32, #tpu.memory_space<vmem>>, vector<1x16x512xf32>
    %18 = vector.shape_cast %17 : vector<1x16x512xf32> to vector<16x512xf32>
    %19 = vector.extract_strided_slice %18 {offsets = [0, 0], sizes = [1, 128], strides = [1, 1]} : vector<16x512xf32> to vector<1x128xf32>
    %20 = vector.shape_cast %19 : vector<1x128xf32> to vector<128xf32>
    %21 = vector.extract_strided_slice %18 {offsets = [1, 0], sizes = [1, 128], strides = [1, 1]} : vector<16x512xf32> to vector<1x128xf32>
    %22 = vector.shape_cast %21 : vector<1x128xf32> to vector<128xf32>
    %23 = vector.extract_strided_slice %18 {offsets = [2, 0], sizes = [1, 128], strides = [1, 1]} : vector<16x512xf32> to vector<1x128xf32>
    %24 = vector.shape_cast %23 : vector<1x128xf32> to vector<128xf32>
    %25 = vector.extract_strided_slice %18 {offsets = [3, 0], sizes = [1, 128], strides = [1, 1]} : vector<16x512xf32> to vector<1x128xf32>
    %26 = vector.shape_cast %25 : vector<1x128xf32> to vector<128xf32>
    %27 = vector.extract_strided_slice %18 {offsets = [4, 0], sizes = [1, 128], strides = [1, 1]} : vector<16x512xf32> to vector<1x128xf32>
    %28 = vector.shape_cast %27 : vector<1x128xf32> to vector<128xf32>
    %29 = vector.extract_strided_slice %18 {offsets = [5, 0], sizes = [1, 128], strides = [1, 1]} : vector<16x512xf32> to vector<1x128xf32>
    %30 = vector.shape_cast %29 : vector<1x128xf32> to vector<128xf32>
    %31 = vector.extract_strided_slice %18 {offsets = [6, 0], sizes = [1, 128], strides = [1, 1]} : vector<16x512xf32> to vector<1x128xf32>
    %32 = vector.shape_cast %31 : vector<1x128xf32> to vector<128xf32>
    %33 = vector.extract_strided_slice %18 {offsets = [7, 0], sizes = [1, 128], strides = [1, 1]} : vector<16x512xf32> to vector<1x128xf32>
    %34 = vector.shape_cast %33 : vector<1x128xf32> to vector<128xf32>
    %35 = vector.extract_strided_slice %18 {offsets = [8, 0], sizes = [1, 128], strides = [1, 1]} : vector<16x512xf32> to vector<1x128xf32>
    %36 = vector.shape_cast %35 : vector<1x128xf32> to vector<128xf32>
    %37 = vector.extract_strided_slice %18 {offsets = [9, 0], sizes = [1, 128], strides = [1, 1]} : vector<16x512xf32> to vector<1x128xf32>
    %38 = vector.shape_cast %37 : vector<1x128xf32> to vector<128xf32>
    %39 = vector.extract_strided_slice %18 {offsets = [10, 0], sizes = [1, 128], strides = [1, 1]} : vector<16x512xf32> to vector<1x128xf32>
    %40 = vector.shape_cast %39 : vector<1x128xf32> to vector<128xf32>
    %41 = vector.extract_strided_slice %18 {offsets = [11, 0], sizes = [1, 128], strides = [1, 1]} : vector<16x512xf32> to vector<1x128xf32>
    %42 = vector.shape_cast %41 : vector<1x128xf32> to vector<128xf32>
    %43 = vector.extract_strided_slice %18 {offsets = [12, 0], sizes = [1, 128], strides = [1, 1]} : vector<16x512xf32> to vector<1x128xf32>
    %44 = vector.shape_cast %43 : vector<1x128xf32> to vector<128xf32>
    %45 = vector.extract_strided_slice %18 {offsets = [13, 0], sizes = [1, 128], strides = [1, 1]} : vector<16x512xf32> to vector<1x128xf32>
    %46 = vector.shape_cast %45 : vector<1x128xf32> to vector<128xf32>
    %47 = vector.extract_strided_slice %18 {offsets = [14, 0], sizes = [1, 128], strides = [1, 1]} : vector<16x512xf32> to vector<1x128xf32>
    %48 = vector.shape_cast %47 : vector<1x128xf32> to vector<128xf32>
    %49 = vector.extract_strided_slice %18 {offsets = [15, 0], sizes = [1, 512], strides = [1, 1]} : vector<16x512xf32> to vector<1x512xf32>
    %50 = vector.shape_cast %49 : vector<1x512xf32> to vector<512xf32>
    %c0_20 = arith.constant 0 : index
    %c0_21 = arith.constant 0 : index
    %c0_22 = arith.constant 0 : index
    %51 = vector.load %arg11[%c0_20, %c0_21, %c0_22] : memref<2x8x128xf32, #tpu.memory_space<vmem>>, vector<2x8x128xf32>
    %52 = vector.shape_cast %51 : vector<2x8x128xf32> to vector<16x128xf32>
    %53 = arith.truncf %52 : vector<16x128xf32> to vector<16x128xbf16>
    %c0_23 = arith.constant 0 : index
    %c0_24 = arith.constant 0 : index
    %c0_25 = arith.constant 0 : index
    %54 = vector.load %arg3[%c0_23, %c0_24, %c0_25] : memref<2x8x128xbf16, #tpu.memory_space<vmem>>, vector<2x8x128xbf16>
    %55 = vector.shape_cast %54 : vector<2x8x128xbf16> to vector<16x128xbf16>
    %cst = arith.constant dense<0.000000e+00> : vector<16x384xf32>
    %56 = tpu.matmul %53, %4, %cst {dimension_numbers = #tpu.dot_dimension_numbers<[1], [0], [0], [1], [0, 0, 1, 1], [], []>} : vector<16x128xbf16>, vector<128x384xbf16>, vector<16x384xf32> -> vector<16x384xf32>
    %57 = vector.extract_strided_slice %56 {offsets = [0, 0], sizes = [16, 128], strides = [1, 1]} : vector<16x384xf32> to vector<16x128xf32>
    %58 = vector.shape_cast %20 : vector<128xf32> to vector<1x128xf32>
    %59 = vector.broadcast %58 : vector<1x128xf32> to vector<16x128xf32>
    %60 = arith.addf %57, %59 : vector<16x128xf32>
    %61 = vector.shape_cast %60 : vector<16x128xf32> to vector<2x8x128xf32>
    %62 = arith.truncf %61 : vector<2x8x128xf32> to vector<2x8x128xbf16>
    %63 = vector.extract_strided_slice %56 {offsets = [0, 128], sizes = [16, 128], strides = [1, 1]} : vector<16x384xf32> to vector<16x128xf32>
    %64 = vector.shape_cast %22 : vector<128xf32> to vector<1x128xf32>
    %65 = vector.broadcast %64 : vector<1x128xf32> to vector<16x128xf32>
    %66 = arith.addf %63, %65 : vector<16x128xf32>
    %67 = vector.shape_cast %66 : vector<16x128xf32> to vector<2x8x128xf32>
    %68 = arith.truncf %67 : vector<2x8x128xf32> to vector<2x8x128xbf16>
    %69 = vector.extract_strided_slice %56 {offsets = [0, 256], sizes = [16, 128], strides = [1, 1]} : vector<16x384xf32> to vector<16x128xf32>
    %70 = vector.shape_cast %24 : vector<128xf32> to vector<1x128xf32>
    %71 = vector.broadcast %70 : vector<1x128xf32> to vector<16x128xf32>
    %72 = arith.addf %69, %71 : vector<16x128xf32>
    %73 = vector.shape_cast %72 : vector<16x128xf32> to vector<2x8x128xf32>
    %74 = arith.truncf %73 : vector<2x8x128xf32> to vector<2x8x128xbf16>
    %cst_26 = arith.constant dense<0.000000e+00> : vector<2x8x8xf32>
    %75 = tpu.matmul %62, %68, %cst_26 {dimension_numbers = #tpu.dot_dimension_numbers<[2], [2], [1], [1], [0, 0, 0, 1, 1, 1], [0], [0]>} : vector<2x8x128xbf16>, vector<2x8x128xbf16>, vector<2x8x8xf32> -> vector<2x8x8xf32>
    %c0_27 = arith.constant 0 : index
    %c0_28 = arith.constant 0 : index
    %76 = vector.load %arg12[%c0_27, %c0_28] : memref<8x8xf32, #tpu.memory_space<vmem>>, vector<8x8xf32>
    %77 = vector.shape_cast %76 : vector<8x8xf32> to vector<1x8x8xf32>
    %78 = vector.broadcast %77 : vector<1x8x8xf32> to vector<2x8x8xf32>
    %79 = arith.addf %75, %78 : vector<2x8x8xf32>
    %cst_29 = arith.constant dense<0xFF800000> : vector<2x8xf32>
    %80 = vector.multi_reduction <maximumf>, %79, %cst_29 [2] : vector<2x8x8xf32> to vector<2x8xf32>
    %81 = vector.shape_cast %80 : vector<2x8xf32> to vector<2x8x1xf32>
    %82 = vector.broadcast %81 : vector<2x8x1xf32> to vector<2x8x8xf32>
    %83 = arith.subf %79, %82 : vector<2x8x8xf32>
    %84 = math.exp %83 : vector<2x8x8xf32>
    %cst_30 = arith.constant dense<0.000000e+00> : vector<2x8xf32>
    %85 = vector.multi_reduction <add>, %84, %cst_30 [2] : vector<2x8x8xf32> to vector<2x8xf32>
    %86 = vector.shape_cast %85 : vector<2x8xf32> to vector<2x8x1xf32>
    %87 = vector.broadcast %86 : vector<2x8x1xf32> to vector<2x8x8xf32>
    %88 = arith.divf %84, %87 : vector<2x8x8xf32>
    %89 = arith.truncf %88 : vector<2x8x8xf32> to vector<2x8x8xbf16>
    %cst_31 = arith.constant dense<0.000000e+00> : vector<2x8x128xf32>
    %90 = tpu.matmul %89, %74, %cst_31 {dimension_numbers = #tpu.dot_dimension_numbers<[2], [1], [1], [2], [0, 0, 0, 1, 1, 2], [0], [0]>} : vector<2x8x8xbf16>, vector<2x8x128xbf16>, vector<2x8x128xf32> -> vector<2x8x128xf32>
    %91 = vector.shape_cast %90 : vector<2x8x128xf32> to vector<16x128xf32>
    %92 = arith.truncf %91 : vector<16x128xf32> to vector<16x128xbf16>
    %cst_32 = arith.constant dense<0.000000e+00> : vector<16x128xf32>
    %93 = tpu.matmul %92, %8, %cst_32 {dimension_numbers = #tpu.dot_dimension_numbers<[1], [0], [0], [1], [0, 0, 1, 1], [], []>} : vector<16x128xbf16>, vector<128x128xbf16>, vector<16x128xf32> -> vector<16x128xf32>
    %94 = vector.shape_cast %26 : vector<128xf32> to vector<1x128xf32>
    %95 = vector.broadcast %94 : vector<1x128xf32> to vector<16x128xf32>
    %96 = arith.addf %93, %95 : vector<16x128xf32>
    %97 = arith.addf %52, %96 : vector<16x128xf32>
    %cst_33 = arith.constant dense<0.000000e+00> : vector<16xf32>
    %98 = vector.multi_reduction <add>, %97, %cst_33 [1] : vector<16x128xf32> to vector<16xf32>
    %99 = vector.shape_cast %98 : vector<16xf32> to vector<16x1xf32>
    %cst_34 = arith.constant 1.280000e+02 : f32
    %100 = vector.broadcast %cst_34 : f32 to vector<16x1xf32>
    %101 = arith.divf %99, %100 : vector<16x1xf32>
    %102 = vector.broadcast %101 : vector<16x1xf32> to vector<16x128xf32>
    %103 = arith.subf %97, %102 : vector<16x128xf32>
    %104 = arith.mulf %103, %103 : vector<16x128xf32>
    %cst_35 = arith.constant dense<0.000000e+00> : vector<16xf32>
    %105 = vector.multi_reduction <add>, %104, %cst_35 [1] : vector<16x128xf32> to vector<16xf32>
    %106 = vector.shape_cast %105 : vector<16xf32> to vector<16x1xf32>
    %cst_36 = arith.constant 1.280000e+02 : f32
    %107 = vector.broadcast %cst_36 : f32 to vector<16x1xf32>
    %108 = arith.divf %106, %107 : vector<16x1xf32>
    %109 = vector.broadcast %101 : vector<16x1xf32> to vector<16x128xf32>
    %110 = arith.subf %97, %109 : vector<16x128xf32>
    %cst_37 = arith.constant 9.99999974E-6 : f32
    %111 = vector.broadcast %cst_37 : f32 to vector<16x1xf32>
    %112 = arith.addf %108, %111 : vector<16x1xf32>
    %113 = math.rsqrt %112 : vector<16x1xf32>
    %114 = vector.broadcast %113 : vector<16x1xf32> to vector<16x128xf32>
    %115 = arith.mulf %110, %114 : vector<16x128xf32>
    %116 = vector.shape_cast %36 : vector<128xf32> to vector<1x128xf32>
    %117 = vector.broadcast %116 : vector<1x128xf32> to vector<16x128xf32>
    %118 = arith.mulf %115, %117 : vector<16x128xf32>
    %119 = vector.shape_cast %38 : vector<128xf32> to vector<1x128xf32>
    %120 = vector.broadcast %119 : vector<1x128xf32> to vector<16x128xf32>
    %121 = arith.addf %118, %120 : vector<16x128xf32>
    %122 = arith.truncf %121 : vector<16x128xf32> to vector<16x128xbf16>
    %cst_38 = arith.constant dense<0.000000e+00> : vector<16x128xf32>
    %123 = tpu.matmul %122, %10, %cst_38 {dimension_numbers = #tpu.dot_dimension_numbers<[1], [0], [0], [1], [0, 0, 1, 1], [], []>} : vector<16x128xbf16>, vector<128x128xbf16>, vector<16x128xf32> -> vector<16x128xf32>
    %124 = vector.shape_cast %28 : vector<128xf32> to vector<1x128xf32>
    %125 = vector.broadcast %124 : vector<1x128xf32> to vector<16x128xf32>
    %126 = arith.addf %123, %125 : vector<16x128xf32>
    %127 = vector.shape_cast %126 : vector<16x128xf32> to vector<2x8x128xf32>
    %128 = arith.truncf %127 : vector<2x8x128xf32> to vector<2x8x128xbf16>
    %cst_39 = arith.constant dense<0.000000e+00> : vector<16x256xf32>
    %129 = tpu.matmul %55, %6, %cst_39 {dimension_numbers = #tpu.dot_dimension_numbers<[1], [0], [0], [1], [0, 0, 1, 1], [], []>} : vector<16x128xbf16>, vector<128x256xbf16>, vector<16x256xf32> -> vector<16x256xf32>
    %130 = vector.extract_strided_slice %129 {offsets = [0, 0], sizes = [16, 128], strides = [1, 1]} : vector<16x256xf32> to vector<16x128xf32>
    %131 = vector.shape_cast %30 : vector<128xf32> to vector<1x128xf32>
    %132 = vector.broadcast %131 : vector<1x128xf32> to vector<16x128xf32>
    %133 = arith.addf %130, %132 : vector<16x128xf32>
    %134 = vector.shape_cast %133 : vector<16x128xf32> to vector<2x8x128xf32>
    %135 = arith.truncf %134 : vector<2x8x128xf32> to vector<2x8x128xbf16>
    %136 = vector.extract_strided_slice %129 {offsets = [0, 128], sizes = [16, 128], strides = [1, 1]} : vector<16x256xf32> to vector<16x128xf32>
    %137 = vector.shape_cast %32 : vector<128xf32> to vector<1x128xf32>
    %138 = vector.broadcast %137 : vector<1x128xf32> to vector<16x128xf32>
    %139 = arith.addf %136, %138 : vector<16x128xf32>
    %140 = vector.shape_cast %139 : vector<16x128xf32> to vector<2x8x128xf32>
    %141 = arith.truncf %140 : vector<2x8x128xf32> to vector<2x8x128xbf16>
    %cst_40 = arith.constant dense<0.000000e+00> : vector<2x8x8xf32>
    %142 = tpu.matmul %128, %135, %cst_40 {dimension_numbers = #tpu.dot_dimension_numbers<[2], [2], [1], [1], [0, 0, 0, 1, 1, 1], [0], [0]>} : vector<2x8x128xbf16>, vector<2x8x128xbf16>, vector<2x8x8xf32> -> vector<2x8x8xf32>
    %cst_41 = arith.constant dense<0xFF800000> : vector<2x8xf32>
    %143 = vector.multi_reduction <maximumf>, %142, %cst_41 [2] : vector<2x8x8xf32> to vector<2x8xf32>
    %144 = vector.shape_cast %143 : vector<2x8xf32> to vector<2x8x1xf32>
    %145 = vector.broadcast %144 : vector<2x8x1xf32> to vector<2x8x8xf32>
    %146 = arith.subf %142, %145 : vector<2x8x8xf32>
    %147 = math.exp %146 : vector<2x8x8xf32>
    %cst_42 = arith.constant dense<0.000000e+00> : vector<2x8xf32>
    %148 = vector.multi_reduction <add>, %147, %cst_42 [2] : vector<2x8x8xf32> to vector<2x8xf32>
    %149 = vector.shape_cast %148 : vector<2x8xf32> to vector<2x8x1xf32>
    %150 = vector.broadcast %149 : vector<2x8x1xf32> to vector<2x8x8xf32>
    %151 = arith.divf %147, %150 : vector<2x8x8xf32>
    %152 = arith.truncf %151 : vector<2x8x8xf32> to vector<2x8x8xbf16>
    %cst_43 = arith.constant dense<0.000000e+00> : vector<2x8x128xf32>
    %153 = tpu.matmul %152, %141, %cst_43 {dimension_numbers = #tpu.dot_dimension_numbers<[2], [1], [1], [2], [0, 0, 0, 1, 1, 2], [0], [0]>} : vector<2x8x8xbf16>, vector<2x8x128xbf16>, vector<2x8x128xf32> -> vector<2x8x128xf32>
    %154 = vector.shape_cast %153 : vector<2x8x128xf32> to vector<16x128xf32>
    %155 = arith.truncf %154 : vector<16x128xf32> to vector<16x128xbf16>
    %cst_44 = arith.constant dense<0.000000e+00> : vector<16x128xf32>
    %156 = tpu.matmul %155, %12, %cst_44 {dimension_numbers = #tpu.dot_dimension_numbers<[1], [0], [0], [1], [0, 0, 1, 1], [], []>} : vector<16x128xbf16>, vector<128x128xbf16>, vector<16x128xf32> -> vector<16x128xf32>
    %157 = vector.shape_cast %34 : vector<128xf32> to vector<1x128xf32>
    %158 = vector.broadcast %157 : vector<1x128xf32> to vector<16x128xf32>
    %159 = arith.addf %156, %158 : vector<16x128xf32>
    %160 = arith.addf %121, %159 : vector<16x128xf32>
    %cst_45 = arith.constant dense<0.000000e+00> : vector<16xf32>
    %161 = vector.multi_reduction <add>, %160, %cst_45 [1] : vector<16x128xf32> to vector<16xf32>
    %162 = vector.shape_cast %161 : vector<16xf32> to vector<16x1xf32>
    %cst_46 = arith.constant 1.280000e+02 : f32
    %163 = vector.broadcast %cst_46 : f32 to vector<16x1xf32>
    %164 = arith.divf %162, %163 : vector<16x1xf32>
    %165 = vector.broadcast %164 : vector<16x1xf32> to vector<16x128xf32>
    %166 = arith.subf %160, %165 : vector<16x128xf32>
    %167 = arith.mulf %166, %166 : vector<16x128xf32>
    %cst_47 = arith.constant dense<0.000000e+00> : vector<16xf32>
    %168 = vector.multi_reduction <add>, %167, %cst_47 [1] : vector<16x128xf32> to vector<16xf32>
    %169 = vector.shape_cast %168 : vector<16xf32> to vector<16x1xf32>
    %cst_48 = arith.constant 1.280000e+02 : f32
    %170 = vector.broadcast %cst_48 : f32 to vector<16x1xf32>
    %171 = arith.divf %169, %170 : vector<16x1xf32>
    %172 = vector.broadcast %164 : vector<16x1xf32> to vector<16x128xf32>
    %173 = arith.subf %160, %172 : vector<16x128xf32>
    %cst_49 = arith.constant 9.99999974E-6 : f32
    %174 = vector.broadcast %cst_49 : f32 to vector<16x1xf32>
    %175 = arith.addf %171, %174 : vector<16x1xf32>
    %176 = math.rsqrt %175 : vector<16x1xf32>
    %177 = vector.broadcast %176 : vector<16x1xf32> to vector<16x128xf32>
    %178 = arith.mulf %173, %177 : vector<16x128xf32>
    %179 = vector.shape_cast %40 : vector<128xf32> to vector<1x128xf32>
    %180 = vector.broadcast %179 : vector<1x128xf32> to vector<16x128xf32>
    %181 = arith.mulf %178, %180 : vector<16x128xf32>
    %182 = vector.shape_cast %42 : vector<128xf32> to vector<1x128xf32>
    %183 = vector.broadcast %182 : vector<1x128xf32> to vector<16x128xf32>
    %184 = arith.addf %181, %183 : vector<16x128xf32>
    %185 = arith.truncf %184 : vector<16x128xf32> to vector<16x128xbf16>
    %cst_50 = arith.constant dense<0.000000e+00> : vector<16x512xf32>
    %186 = tpu.matmul %185, %14, %cst_50 {dimension_numbers = #tpu.dot_dimension_numbers<[1], [0], [0], [1], [0, 0, 1, 1], [], []>} : vector<16x128xbf16>, vector<128x512xbf16>, vector<16x512xf32> -> vector<16x512xf32>
    %187 = vector.shape_cast %50 : vector<512xf32> to vector<1x512xf32>
    %188 = vector.broadcast %187 : vector<1x512xf32> to vector<16x512xf32>
    %189 = arith.addf %186, %188 : vector<16x512xf32>
    %cst_51 = arith.constant 0.000000e+00 : f32
    %190 = vector.broadcast %cst_51 : f32 to vector<16x512xf32>
    %191 = arith.maximumf %189, %190 : vector<16x512xf32>
    %192 = arith.truncf %191 : vector<16x512xf32> to vector<16x512xbf16>
    %cst_52 = arith.constant dense<0.000000e+00> : vector<16x128xf32>
    %193 = tpu.matmul %192, %16, %cst_52 {dimension_numbers = #tpu.dot_dimension_numbers<[1], [0], [0], [1], [0, 0, 1, 1], [], []>} : vector<16x512xbf16>, vector<512x128xbf16>, vector<16x128xf32> -> vector<16x128xf32>
    %194 = vector.shape_cast %48 : vector<128xf32> to vector<1x128xf32>
    %195 = vector.broadcast %194 : vector<1x128xf32> to vector<16x128xf32>
    %196 = arith.addf %193, %195 : vector<16x128xf32>
    %197 = arith.addf %184, %196 : vector<16x128xf32>
    %cst_53 = arith.constant dense<0.000000e+00> : vector<16xf32>
    %198 = vector.multi_reduction <add>, %197, %cst_53 [1] : vector<16x128xf32> to vector<16xf32>
    %199 = vector.shape_cast %198 : vector<16xf32> to vector<16x1xf32>
    %cst_54 = arith.constant 1.280000e+02 : f32
    %200 = vector.broadcast %cst_54 : f32 to vector<16x1xf32>
    %201 = arith.divf %199, %200 : vector<16x1xf32>
    %202 = vector.broadcast %201 : vector<16x1xf32> to vector<16x128xf32>
    %203 = arith.subf %197, %202 : vector<16x128xf32>
    %204 = arith.mulf %203, %203 : vector<16x128xf32>
    %cst_55 = arith.constant dense<0.000000e+00> : vector<16xf32>
    %205 = vector.multi_reduction <add>, %204, %cst_55 [1] : vector<16x128xf32> to vector<16xf32>
    %206 = vector.shape_cast %205 : vector<16xf32> to vector<16x1xf32>
    %cst_56 = arith.constant 1.280000e+02 : f32
    %207 = vector.broadcast %cst_56 : f32 to vector<16x1xf32>
    %208 = arith.divf %206, %207 : vector<16x1xf32>
    %209 = vector.broadcast %201 : vector<16x1xf32> to vector<16x128xf32>
    %210 = arith.subf %197, %209 : vector<16x128xf32>
    %cst_57 = arith.constant 9.99999974E-6 : f32
    %211 = vector.broadcast %cst_57 : f32 to vector<16x1xf32>
    %212 = arith.addf %208, %211 : vector<16x1xf32>
    %213 = math.rsqrt %212 : vector<16x1xf32>
    %214 = vector.broadcast %213 : vector<16x1xf32> to vector<16x128xf32>
    %215 = arith.mulf %210, %214 : vector<16x128xf32>
    %216 = vector.shape_cast %44 : vector<128xf32> to vector<1x128xf32>
    %217 = vector.broadcast %216 : vector<1x128xf32> to vector<16x128xf32>
    %218 = arith.mulf %215, %217 : vector<16x128xf32>
    %219 = vector.shape_cast %46 : vector<128xf32> to vector<1x128xf32>
    %220 = vector.broadcast %219 : vector<1x128xf32> to vector<16x128xf32>
    %221 = arith.addf %218, %220 : vector<16x128xf32>
    %222 = vector.shape_cast %221 : vector<16x128xf32> to vector<2x8x128xf32>
    %c0_58 = arith.constant 0 : index
    %c0_59 = arith.constant 0 : index
    %c0_60 = arith.constant 0 : index
    %223 = vector.load %arg11[%c0_58, %c0_59, %c0_60] : memref<2x8x128xf32, #tpu.memory_space<vmem>>, vector<2x8x128xf32>
    tpu.vector_store %arg11[%c0_58, %c0_59, %c0_60], %222 {strides = array<i32>} : memref<2x8x128xf32, #tpu.memory_space<vmem>>, vector<2x8x128xf32>,
    %c1_i32 = arith.constant 1 : i32
    %224 = arith.cmpi eq, %arg1, %c1_i32 : i32
    %225 = arith.extui %224 : i1 to i32
    %c0_i32_61 = arith.constant 0 : i32
    %226 = arith.cmpi ne, %225, %c0_i32_61 : i32
    scf.if %226 {
      %c0_62 = arith.constant 0 : index
      %c0_63 = arith.constant 0 : index
      %c0_64 = arith.constant 0 : index
      %227 = vector.load %arg8[%c0_62, %c0_63, %c0_64] : memref<2x8x128xf32, #tpu.memory_space<vmem>>, vector<2x8x128xf32>
      tpu.vector_store %arg8[%c0_62, %c0_63, %c0_64], %222 {strides = array<i32>} : memref<2x8x128xf32, #tpu.memory_space<vmem>>, vector<2x8x128xf32>,
      %c0_65 = arith.constant 0 : index
      %c0_66 = arith.constant 0 : index
      %c0_67 = arith.constant 0 : index
      %228 = vector.load %arg9[%c0_65, %c0_66, %c0_67] : memref<2x8x8xf32, #tpu.memory_space<vmem>>, vector<2x8x8xf32>
      tpu.vector_store %arg9[%c0_65, %c0_66, %c0_67], %88 {strides = array<i32>} : memref<2x8x8xf32, #tpu.memory_space<vmem>>, vector<2x8x8xf32>,
      %c0_68 = arith.constant 0 : index
      %c0_69 = arith.constant 0 : index
      %c0_70 = arith.constant 0 : index
      %229 = vector.load %arg10[%c0_68, %c0_69, %c0_70] : memref<2x8x8xf32, #tpu.memory_space<vmem>>, vector<2x8x8xf32>
      tpu.vector_store %arg10[%c0_68, %c0_69, %c0_70], %151 {strides = array<i32>} : memref<2x8x8xf32, #tpu.memory_space<vmem>>, vector<2x8x8xf32>,
    } else {
    }
    return
  }
  func.func @transform_0(%arg0: i32, %arg1: i32) -> (i32, i32, i32) {
    %c0_i32 = arith.constant 0 : i32
    %c0_i32_0 = arith.constant 0 : i32
    %c0_i32_1 = arith.constant 0 : i32
    return %arg0, %c0_i32, %c0_i32_0 : i32, i32, i32
  }
  func.func @transform_1(%arg0: i32, %arg1: i32) -> (i32, i32, i32) {
    %c0_i32 = arith.constant 0 : i32
    %c0_i32_0 = arith.constant 0 : i32
    %c0_i32_1 = arith.constant 0 : i32
    return %arg0, %c0_i32, %c0_i32_0 : i32, i32, i32
  }
  func.func @transform_2(%arg0: i32, %arg1: i32) -> (i32, i32, i32) {
    %c0_i32 = arith.constant 0 : i32
    %c0_i32_0 = arith.constant 0 : i32
    %c0_i32_1 = arith.constant 0 : i32
    return %arg1, %c0_i32, %c0_i32_0 : i32, i32, i32
  }
  func.func @transform_3(%arg0: i32, %arg1: i32) -> (i32, i32, i32) {
    %c0_i32 = arith.constant 0 : i32
    %c0_i32_0 = arith.constant 0 : i32
    %c0_i32_1 = arith.constant 0 : i32
    return %arg1, %c0_i32, %c0_i32_0 : i32, i32, i32
  }
  func.func @transform_4(%arg0: i32, %arg1: i32) -> (i32, i32, i32) {
    %c0_i32 = arith.constant 0 : i32
    %c0_i32_0 = arith.constant 0 : i32
    %c0_i32_1 = arith.constant 0 : i32
    return %arg1, %c0_i32, %c0_i32_0 : i32, i32, i32
  }
  func.func @transform_5(%arg0: i32, %arg1: i32) -> (i32, i32, i32) {
    %c0_i32 = arith.constant 0 : i32
    %c0_i32_0 = arith.constant 0 : i32
    %c0_i32_1 = arith.constant 0 : i32
    return %arg1, %c0_i32, %c0_i32_0 : i32, i32, i32
  }
  func.func @transform_6(%arg0: i32, %arg1: i32) -> (i32, i32, i32) {
    %c0_i32 = arith.constant 0 : i32
    %c0_i32_0 = arith.constant 0 : i32
    %c0_i32_1 = arith.constant 0 : i32
    return %arg0, %c0_i32, %c0_i32_0 : i32, i32, i32
  }
  func.func @transform_7(%arg0: i32, %arg1: i32) -> (i32, i32, i32) {
    %c0_i32 = arith.constant 0 : i32
    %c0_i32_0 = arith.constant 0 : i32
    %c0_i32_1 = arith.constant 0 : i32
    return %arg0, %c0_i32, %c0_i32_0 : i32, i32, i32
  }
  func.func @transform_8(%arg0: i32, %arg1: i32) -> (i32, i32, i32) {
    %c0_i32 = arith.constant 0 : i32
    %c0_i32_0 = arith.constant 0 : i32
    %c0_i32_1 = arith.constant 0 : i32
    return %arg0, %c0_i32, %c0_i32_0 : i32, i32, i32
  }
}

</mosaic_0001>

<bundles_post_ra>
// kernel: decoder_stack_call.1
= control target key start
LH: loop header
LB: loop body
LE: loop exit
PB: predicated region body
PF: predicated region fallthrough
CT: control target
= control target key end

     0   :  { %s4448_s0 = inlined_call_operand.hbm [shape: f32[2,8,128], index: 0, kind: input, shape index: {}]   ;;  %s4449_s1 = inlined_call_operand.hbm [shape: bf16[2,8,128], index: 1, kind: input, shape index: {}]   ;;  %s4450_s2 = inlined_call_operand.hbm [shape: bf16[2,128,1024], index: 2, kind: input, shape index: {}]   ;;  %s4451_s3 = inlined_call_operand.hbm [shape: bf16[2,128,512], index: 3, kind: input, shape index: {}]   ;;  %s4452_s4 = inlined_call_operand.hbm [shape: bf16[2,512,128], index: 4, kind: input, shape index: {}]   ;;  %s4453_s5 = inlined_call_operand.hbm [shape: f32[2,16,512], index: 5, kind: input, shape index: {}]   ;;  %s4454_s6 = inlined_call_operand.hbm [shape: f32[2,8,128], index: 6, kind: output, shape index: {0}]   ;;  %s4455_s7 = inlined_call_operand.hbm [shape: f32[2,8,8], index: 7, kind: output, shape index: {1}]   ;;  %s4456_s8 = inlined_call_operand.hbm [shape: f32[2,8,8], index: 8, kind: output, shape index: {2}]  }
   0x1   :  { %4472 = sst [smem:[#allocation23_spill]] %s4448_s0 }
   0x2   :  { %4473 = sst [smem:[#allocation24_spill]] %s4450_s2 }
   0x3   :  { %4474 = sst [smem:[#allocation25_spill]] %s4451_s3 }
   0x4   :  { %4475 = sst [smem:[#allocation26_spill]] %s4452_s4 }
   0x5   :  { %4476 = sst [smem:[#allocation27_spill]] %s4454_s6 }
   0x6   :  { %4477 = sst [smem:[#allocation28_spill]] %s4456_s8 }
   0x7   :  { %14 = vsyncpa [#allocation5], 0 }
   0x8   :  { %15 = vsyncpa [#allocation8], 0 }
   0x9   :  { %16 = vsyncpa [#allocation6], 0 }
   0xa   :  { %17 = vsyncpa [#allocation15], 0  ;;  %s3680_s27 = smov 0   ;;  %s3682_s28 = smov 0  }
   0xb   :  { %s3684_s29 = smov 0   ;;  %s3686_s30 = smov 0  }
   0xc   :  { %s3688_s9 = smov 0   ;;  %s3690_s10 = smov 0  }
   0xd LB: > { %s3709_s11 = sadd.s32 4294967295, %s3610_s10   ;;  %p101_p0 = scmp.ne.s32.totalorder %s3598_s29, %s3594_s28  ;;  %s3610_s10 = sphi %s3690_s10, %s23_s10   ;;  %s3606_s9 = sphi %s3688_s9, %s4511_s9   ;;  %s3602_s30 = sphi %s3686_s30, %s4510_s30   ;;  %s3598_s29 = sphi %s3684_s29, %s4509_s29   ;;  %s3594_s28 = sphi %s3682_s28, %s4508_s28   ;;  %s3590_s27 = sphi %s3680_s27, %s4507_s27  }
   0xe   : > { %p102_p1 = scmp.eq.s32.totalorder %s3610_s10, 0  ;;  %p107_p2 = scmp.ne.s32.totalorder %s3594_s28, %s3590_s27 }
   0xf   : > { %p4457_p3 = scmp.eq.s32.totalorder %s3709_s11, 0  ;;  %p2661_p5 = scmp.ge.s32.totalorder %s3610_s10, 1 }
  0x10   : > { %p103_p4 = por %p102_p1, %p101_p0  ;;  %p274_p7 = scmp.lt.s32.totalorder %s3610_s10, 3 }
  0x11   : > { %p3720_p6 = por %p4457_p3, %p107_p2  ;;  %s3612_s15 = smov [#allocation4]  }
  0x12   : > { %p3725_p8 = pnand %p2661_p5, %p274_p7  ;;  %s289_s16 = sshll.u32 %s3612_s15, 4  ;;  %s290_s16 = int_to_ptr.vmem [resolvable:$true] %s289_s16 }
  0x13   : > { %s4478_s13 = scalar_select %p3720_p6, 1, 0 }
  0x14   : > { %s4479_s14 = scalar_select %p3725_p8, 1, 0 }
  0x15   : > { %p3083_p9 = pneg %p3725_p8  ;;  %p3105_p10 = scmp.lt.s32.totalorder %s3610_s10, 2 }
  0x16   : > { %s32_s19 = sadd.s32 1, %s3606_s9  ;;  %s4482_s0 = sld [smem:[#allocation23_spill]] }
  0x17   : > { %p3734_p11 = pnand %p3083_p9, %p4457_p3  ;;  %p3738_p12 = pnand %p3105_p10, %p103_p4 }
  0x19   : > { %s4480_s17 = scalar_select %p3734_p11, 1, 0 }
  0x1a   : > { %s4481_s18 = scalar_select %p3738_p12, 1, 0 }
  0x1b   : > { %p4463_p0 = pneg %p3734_p11 }
  0x1c   : > { %s3290_s22 = scalar_lea.hbm %s4482_s0, 256 }
  0x1d   : > { %p3291_p13 = scmp.ne.s32.totalorder %s4482_s0, %s3290_s22  ;;  %p3297_p4 = scmp.lt.u32.totalorder %s3290_s22, %s4482_s0 }
  0x1f   : > { %p3293_p1 = pnand %p4463_p0, %p3291_p13 }
  0x21   : > { %p3294_p2 = pneg %p3293_p1 }
  0x23   : > { %p3299_p5 = pnand %p3297_p4, %p3294_p2 }
  0x25   : > { %3302 = shalt.err (!%p3299_p5)
}
  0x26   : > { %s3303_s27 = scalar_lea.vmem %s290_s16, 256  ;;  %p3311_p3 = scmp.lt.s32.totalorder %s290_s16, %s290_s16 }
  0x27   : > { %p3304_p7 = scmp.ne.s32.totalorder %s290_s16, %s3303_s27  ;;  %p3312_p6 = scmp.lt.s32.totalorder %s3303_s27, %s3303_s27 }
  0x29   : > { %p3306_p9 = pnand %p3304_p7, %p4463_p0  ;;  %p3313_p8 = por %p3312_p6, %p3311_p3 }
  0x2b   : > { %p3307_p10 = pneg %p3306_p9 }
  0x2d   : > { %p3314_p12 = pnand %p3313_p8, %p3307_p10 }
  0x2f   : > { %3317 = shalt.err (!%p3314_p12)
}
  0x30   : > { %s3613_s15 = smov 128   ;;  %s3614_s20 = smov 8  }
  0x31   : > { %3086 = dma.hbm_to_vmem [thread:$0]  (!%p3734_p11), %s4482_s0, 256, %s290_s16, [#allocation5], %s3613_s15, %s3613_s15, %s3614_s20  }
  0x32   : > { %p33_p13 = scmp.ge.s32.totalorder %s32_s19, 2  ;;  %s319_s23 = sand.u32 1, %s3610_s10  }
  0x33   : > { %s3767_s24 = sand.u32 1, %s3598_s29   ;;  %s2827_s27 = sshll.u32 %s3606_s9, 13 }
  0x34   : > { %s4513_s19 = smov (%p33_p13, %s32_s19), 0  ;;  %s2665_s25 = sshll.u32 %s3767_s24, 9 }
  0x35   : > { %4483 = sst [smem:[#allocation22_spill]] %s4513_s19  ;;  %s91_s26 = ssub.s32 %s3606_s9, %s4513_s19 }
  0x36   : > { %p92_p3 = scmp.eq.s32.totalorder %s91_s26, 0  ;;  %s4484_s2 = sld [smem:[#allocation24_spill]] }
  0x37   : > { %s323_s16 = scalar_lea.vmem [#allocation9], %s2665_s25  ;;  %s4485_s20 = sadd.s32 1, %s3598_s29 }
  0x38   : > { %s330_s15 = sshll.u32 %s323_s16, 4  ;;  %s2668_s22 = sshll.u32 %s3767_s24, 8  ;;  %s3785_s15 = int_to_ptr.vmem [resolvable:$true] %s330_s15 }
  0x39   : > { %s3783_s21 = scalar_select %p92_p3, %s3598_s29, %s4485_s20  }
  0x3a   : > { %s3788_s0 = scalar_lea.sflag [#allocation5], %s319_s23  ;;  %p4486_p8 = scmp.ne.s32.totalorder %s4481_s18, 0 }
  0x3c   : > { %s3778_s6 = scalar_lea.hbm %s4484_s2, %s2827_s27  ;;  %p3794_p12 = pneg %p4486_p8 }
  0x3d   : > { %s3318_s26 = scalar_lea.hbm %s3778_s6, 8192  ;;  %s3323_s27 = scalar_lea.hbm %s4484_s2, 16384 }
  0x3e   : > { %p3319_p6 = scmp.ne.s32.totalorder %s3778_s6, %s3318_s26  ;;  %p3324_p4 = scmp.lt.u32.totalorder %s3778_s6, %s4484_s2 }
  0x3f   : > { %s4487_s8 = scalar_select %p3794_p12, 1, 0 }
  0x40   : > { %p3321_p1 = pnand %p3794_p12, %p3319_p6  ;;  %p3325_p5 = scmp.lt.u32.totalorder %s3323_s27, %s3318_s26 }
  0x41   : > { %p3327_p9 = scmp.lt.u32.totalorder %s3318_s26, %s3778_s6 }
  0x42   : > { %p3322_p2 = pneg %p3321_p1  ;;  %p3326_p7 = por %p3325_p5, %p3324_p4 }
  0x44   : > { %p3328_p10 = por %p3327_p9, %p3326_p7 }
  0x46   : > { %p3329_p13 = pnand %p3328_p10, %p3322_p2 }
  0x48   : > { %3332 = shalt.err (!%p3329_p13)
}
  0x49   : > { %s3333_s23 = scalar_lea.vmem %s3785_s15, 8192  ;;  %s3615_s12 = smov [#allocation9]  }
  0x4a   : > { %p3334_p3 = scmp.ne.s32.totalorder %s3785_s15, %s3333_s23  ;;  %s3338_s25 = sshll.u32 %s3615_s12, 4  ;;  %s3339_s25 = int_to_ptr.vmem [resolvable:$false] %s3338_s25 }
  0x4b   : > { %s3340_s16 = scalar_lea.vmem %s3339_s25, 16384  ;;  %p3341_p0 = scmp.lt.s32.totalorder %s3785_s15, %s3339_s25 }
  0x4c   : > { %p3336_p6 = pnand %p3334_p3, %p3794_p12  ;;  %p3342_p11 = scmp.lt.s32.totalorder %s3340_s16, %s3333_s23 }
  0x4e   : > { %p3337_p1 = pneg %p3336_p6  ;;  %p3343_p4 = por %p3342_p11, %p3341_p0 }
  0x50   : > { %p3344_p5 = pnand %p3343_p4, %p3337_p1 }
  0x52   : > { %3347 = shalt.err (!%p3344_p5)
}
  0x53   : > { %s4467_s26 = smov 512   ;;  %s4468_s27 = smov 32  }
  0x54   : > { %3093 = dma.hbm_to_vmem [thread:$0]  (!%p4486_p8), %s3778_s6, 8192, %s3785_s15, %s3788_s0, %s4467_s26, %s4467_s26, %s4468_s27  }
  0x55   : > { %s2828_s20 = sshll.u32 %s3606_s9, 12  ;;  %s4488_s3 = sld [smem:[#allocation25_spill]] }
  0x56   : > { %s344_s16 = scalar_lea.vmem [#allocation10], %s2668_s22 }
  0x57   : > { %s351_s2 = sshll.u32 %s344_s16, 4  ;;  %s3831_s2 = int_to_ptr.vmem [resolvable:$true] %s351_s2 }
  0x5b   : > { %s3827_s25 = scalar_lea.hbm %s4488_s3, %s2828_s20  ;;  %s3353_s23 = scalar_lea.hbm %s4488_s3, 8192 }
  0x5c   : > { %s3348_s19 = scalar_lea.hbm %s3827_s25, 4096  ;;  %p3354_p7 = scmp.lt.u32.totalorder %s3827_s25, %s4488_s3 }
  0x5d   : > { %p3349_p11 = scmp.ne.s32.totalorder %s3827_s25, %s3348_s19  ;;  %p3355_p9 = scmp.lt.u32.totalorder %s3353_s23, %s3348_s19 }
  0x5e   : > { %p3357_p13 = scmp.lt.u32.totalorder %s3348_s19, %s3827_s25 }
  0x5f   : > { %p3351_p0 = pnand %p3349_p11, %p3794_p12  ;;  %p3356_p10 = por %p3355_p9, %p3354_p7 }
  0x61   : > { %p3352_p2 = pneg %p3351_p0  ;;  %p3358_p3 = por %p3357_p13, %p3356_p10 }
  0x63   : > { %p3359_p6 = pnand %p3358_p3, %p3352_p2 }
  0x65   : > { %3362 = shalt.err (!%p3359_p6)
}
  0x66   : > { %s3363_s16 = scalar_lea.vmem %s3831_s2, 4096  ;;  %s3618_s6 = smov [#allocation10]  }
  0x67   : > { %p3364_p1 = scmp.ne.s32.totalorder %s3831_s2, %s3363_s16  ;;  %s3368_s15 = sshll.u32 %s3618_s6, 4  ;;  %s3369_s15 = int_to_ptr.vmem [resolvable:$false] %s3368_s15 }
  0x68   : > { %s3370_s26 = scalar_lea.vmem %s3369_s15, 8192  ;;  %p3371_p11 = scmp.lt.s32.totalorder %s3831_s2, %s3369_s15 }
  0x69   : > { %p3366_p4 = pnand %p3364_p1, %p3794_p12  ;;  %p3372_p0 = scmp.lt.s32.totalorder %s3370_s26, %s3363_s16 }
  0x6b   : > { %p3367_p5 = pneg %p3366_p4  ;;  %p3373_p7 = por %p3372_p0, %p3371_p11 }
  0x6d   : > { %p3374_p9 = pnand %p3373_p7, %p3367_p5 }
  0x6f   : > { %3377 = shalt.err (!%p3374_p9)
}
  0x70   : > { %s3619_s19 = smov 256   ;;  %s3620_s23 = smov 16  }
  0x71   : > { %3096 = dma.hbm_to_vmem [thread:$0]  (!%p4486_p8), %s3827_s25, 4096, %s3831_s2, %s3788_s0, %s3619_s19, %s3619_s19, %s3620_s23  }
  0x72   : > { %s4489_s4 = sld [smem:[#allocation26_spill]]  ;;  %s365_s16 = scalar_lea.vmem [#allocation11], %s2668_s22 }
  0x73   : > { %s372_s26 = sshll.u32 %s365_s16, 4  ;;  %s3864_s26 = int_to_ptr.vmem [resolvable:$true] %s372_s26 }
  0x78   : > { %s3860_s15 = scalar_lea.hbm %s4489_s4, %s2828_s20  ;;  %s3383_s19 = scalar_lea.hbm %s4489_s4, 8192 }
  0x79   : > { %s3378_s27 = scalar_lea.hbm %s3860_s15, 4096  ;;  %p3384_p3 = scmp.lt.u32.totalorder %s3860_s15, %s4489_s4 }
  0x7a   : > { %p3379_p2 = scmp.ne.s32.totalorder %s3860_s15, %s3378_s27  ;;  %p3385_p6 = scmp.lt.u32.totalorder %s3383_s19, %s3378_s27 }
  0x7b   : > { %p3387_p4 = scmp.lt.u32.totalorder %s3378_s27, %s3860_s15 }
  0x7c   : > { %p3381_p10 = pnand %p3379_p2, %p3794_p12  ;;  %p3386_p1 = por %p3385_p6, %p3384_p3 }
  0x7e   : > { %p3382_p13 = pneg %p3381_p10  ;;  %p3388_p5 = por %p3387_p4, %p3386_p1 }
  0x80   : > { %p3389_p11 = pnand %p3388_p5, %p3382_p13 }
  0x82   : > { %3392 = shalt.err (!%p3389_p11)
}
  0x83   : > { %s3393_s22 = scalar_lea.vmem %s3864_s26, 4096  ;;  %s3621_s12 = smov [#allocation11]  }
  0x84   : > { %p3394_p0 = scmp.ne.s32.totalorder %s3864_s26, %s3393_s22  ;;  %s3398_s6 = sshll.u32 %s3621_s12, 4  ;;  %s3399_s6 = int_to_ptr.vmem [resolvable:$false] %s3398_s6 }
  0x85   : > { %s3400_s16 = scalar_lea.vmem %s3399_s6, 8192  ;;  %p3401_p2 = scmp.lt.s32.totalorder %s3864_s26, %s3399_s6 }
  0x86   : > { %p3396_p7 = pnand %p3394_p0, %p3794_p12  ;;  %p3402_p10 = scmp.lt.s32.totalorder %s3400_s16, %s3393_s22 }
  0x88   : > { %p3397_p9 = pneg %p3396_p7  ;;  %p3403_p3 = por %p3402_p10, %p3401_p2 }
  0x8a   : > { %p3404_p6 = pnand %p3403_p3, %p3397_p9 }
  0x8c   : > { %3407 = shalt.err (!%p3404_p6)
}
  0x8d   : > { %s3622_s27 = smov 64   ;;  %s3623_s2 = smov 4  }
  0x8e   : > { %3099 = dma.hbm_to_vmem [thread:$0]  (!%p4486_p8), %s3860_s15, 4096, %s3864_s26, %s3788_s0, %s3622_s27, %s3622_s27, %s3623_s2  }
  0x8f   : > { %s3624_s25 = smov [#allocation7]   ;;  %s2674_s20 = sshll.u32 %s3767_s24, 6 }
  0x90   : > { %s305_s19 = sshll.u32 %s3624_s25, 4  ;;  %s3408_s22 = scalar_lea.hbm %s4449_s1, 128  ;;  %s306_s19 = int_to_ptr.vmem [resolvable:$true] %s305_s19 }
  0x91   : > { %p3409_p13 = scmp.ne.s32.totalorder %s4449_s1, %s3408_s22  ;;  %p4490_p1 = scmp.ne.s32.totalorder %s4480_s17, 0 }
  0x92   : > { %p3415_p0 = scmp.lt.u32.totalorder %s3408_s22, %s4449_s1 }
  0x93   : > { %p4491_p4 = pneg %p4490_p1 }
  0x95   : > { %p3411_p5 = pnand %p3409_p13, %p4491_p4 }
  0x97   : > { %p3412_p11 = pneg %p3411_p5 }
  0x99   : > { %p3417_p7 = pnand %p3415_p0, %p3412_p11 }
  0x9b   : > { %3420 = shalt.err (!%p3417_p7)
}
  0x9c   : > { %s3421_s24 = scalar_lea.vmem %s306_s19, 128  ;;  %p4492_p2 = pmov %p4491_p4 }
  0x9d   : > { %p3422_p9 = scmp.ne.s32.totalorder %s306_s19, %s3421_s24  ;;  %p3429_p6 = scmp.lt.s32.totalorder %s306_s19, %s306_s19 }
  0x9e   : > { %p3430_p8 = scmp.lt.s32.totalorder %s3421_s24, %s3421_s24 }
  0x9f   : > { %p3424_p10 = pnand %p3422_p9, %p4492_p2 }
  0xa0   : > { %p3431_p12 = por %p3430_p8, %p3429_p6 }
  0xa1   : > { %p3425_p3 = pneg %p3424_p10 }
  0xa3   : > { %p3432_p4 = pnand %p3431_p12, %p3425_p3 }
  0xa5   : > { %3435 = shalt.err (!%p3432_p4)
}
  0xa6   : > { %3089 = dma.hbm_to_vmem [thread:$0]  (!%p4490_p1), %s4449_s1, 128, %s306_s19, [#allocation8], %s3622_s27, %s3622_s27, %s3623_s2  }
  0xa7   : > { %s2830_s3 = sshll.u32 %s3606_s9, 10  ;;  %s386_s4 = scalar_lea.vmem [#allocation12], %s2674_s20 }
  0xa8   : > { %s393_s25 = sshll.u32 %s386_s4, 4  ;;  %s3913_s22 = scalar_lea.hbm %s4453_s5, %s2830_s3  ;;  %s3915_s25 = int_to_ptr.vmem [resolvable:$true] %s393_s25 }
  0xa9   : > { %s3436_s17 = scalar_lea.hbm %s3913_s22, 1024  ;;  %p4493_p12 = scmp.ne.s32.totalorder %s4487_s8, 0 }
  0xaa   : > { %p3437_p8 = scmp.ne.s32.totalorder %s3913_s22, %s3436_s17  ;;  %s3441_s19 = scalar_lea.hbm %s4453_s5, 2048 }
  0xab   : > { %p3442_p1 = scmp.lt.u32.totalorder %s3913_s22, %s4453_s5  ;;  %p3443_p11 = scmp.lt.u32.totalorder %s3441_s19, %s3436_s17 }
  0xac   : > { %p3439_p13 = pnand %p3437_p8, %p4493_p12  ;;  %p3445_p7 = scmp.lt.u32.totalorder %s3436_s17, %s3913_s22 }
  0xad   : > { %p3444_p0 = por %p3443_p11, %p3442_p1 }
  0xae   : > { %p3440_p5 = pneg %p3439_p13 }
  0xaf   : > { %p3446_p9 = por %p3445_p7, %p3444_p0 }
  0xb1   : > { %p3447_p2 = pnand %p3446_p9, %p3440_p5 }
  0xb3   : > { %3450 = shalt.err (!%p3447_p2)
}
  0xb4   : > { %s3451_s16 = scalar_lea.vmem %s3915_s25, 1024  ;;  %s3625_s24 = smov [#allocation12]  }
  0xb5   : > { %p3452_p10 = scmp.ne.s32.totalorder %s3915_s25, %s3451_s16  ;;  %s3456_s15 = sshll.u32 %s3625_s24, 4  ;;  %s3457_s15 = int_to_ptr.vmem [resolvable:$false] %s3456_s15 }
  0xb6   : > { %s3458_s26 = scalar_lea.vmem %s3457_s15, 2048  ;;  %p3459_p4 = scmp.lt.s32.totalorder %s3915_s25, %s3457_s15 }
  0xb7   : > { %p3454_p3 = pnand %p3452_p10, %p4493_p12  ;;  %p3460_p8 = scmp.lt.s32.totalorder %s3458_s26, %s3451_s16 }
  0xb9   : > { %p3455_p6 = pneg %p3454_p3  ;;  %p3461_p13 = por %p3460_p8, %p3459_p4 }
  0xbb   : > { %p3462_p1 = pnand %p3461_p13, %p3455_p6 }
  0xbd   : > { %3465 = shalt.err (!%p3462_p1)
}
  0xbe   : > { %p4494_p5 = scmp.ne.s32.totalorder %s4481_s18, 0  ;;  %s4495_s3 = smov 32  }
  0xbf   : > { %s4496_s4 = smov 512   ;;  %p4497_p12 = scmp.ne.s32.totalorder %s4479_s14, 0 }
  0xc0   : > { %3102 = dma.hbm_to_vmem [thread:$0]  (!%p4494_p5), %s3913_s22, 1024, %s3915_s25, %s3788_s0, %s4496_s4, %s4496_s4, %s4495_s3  }
  0xc1   : > { %405 = sbr.rel (%p4497_p12) target bundleno = 4102 (0x1006), region = 44  ;;  %p4498_p11 = scmp.eq.s32.totalorder (!%p4497_p12), %s3709_s11, 0 }
  0xc8   : > { %3569 = dma.done.wait (%p4498_p11), [#allocation5], 256   ;;  %p4499_p0 = pmov %p4498_p11 }
  0xca   : > { %3571 = vsyncadd (%p4499_p0), [#allocation5], 4294967040  ;;  %p4500_p7 = pmov %p4499_p0 }
  0xcb   : > { %p4501_p9 = pmov %p4499_p0 }
  0xcc   : > { %3573 = dma.done.wait (%p4500_p7), [#allocation8], 128  }
  0xcd   : > { %3575 = vsyncadd (%p4501_p9), [#allocation8], 4294967168  ;;  %s415_s18 = sand.u32 1, %s3709_s11   ;;  %s417_s0 = sand.u32 1, %s3594_s28  }
  0xce   : > { %s2680_s8 = sshll.u32 %s417_s0, 9  ;;  %s416_s14 = scalar_lea.sflag [#allocation5], %s415_s18 }
  0xcf   : > { %s3954_s25 = scalar_lea.vmem [#allocation9], %s2680_s8  ;;  %p4502_p2 = scmp.ne.s32.totalorder %s4478_s13, 0 }
  0xd1   : > { %3577 = dma.done.wait (%p4502_p2), %s416_s14, 17408  }
  0xd2   : > { %3579 = vsyncadd (%p4502_p2), %s416_s14, 4294949888  ;;  %s2681_s23 = sshll.u32 %s417_s0, 8  ;;  %s2683_s12 = sshll.u32 %s417_s0, 6 }
  0xd3   : > { %s3960_s22 = scalar_lea.vmem [#allocation10], %s2681_s23  ;;  %s3962_s17 = scalar_lea.vmem [#allocation11], %s2681_s23 }
  0xd4   : > { %s3964_s27 = scalar_lea.vmem [#allocation12], %s2683_s12  ;;  %p2684_p10 = scmp.ne.s32.totalorder %s3602_s30, 0 }
  0xd5   : > { %v499_v0 = vld [vmem:[#allocation4] sm:$0xff] (!%p2684_p10)  ;;  %v500_v1 = vld [vmem:[#allocation4 + $0x8] sm:$0xff] (!%p2684_p10)  ;;  %v503_v2 = vlaneseq (!%p2684_p10)  ;;  %vm509_vm0 = vcmask (!%p2684_p10), 64512   ;;  %v3626_v5 = vmov (!%p2684_p10), -1e+30  }
  0xd6   : > { %498 = sbr.rel (%p2684_p10) target bundleno = 221 (0xdd), region = 72  ;;  %501 = vst [vmem:[#allocation2] sm:$0xff] (!%p2684_p10), %v499_v0  ;;  %502 = vst [vmem:[#allocation2 + $0x8] sm:$0xff] (!%p2684_p10), %v500_v1 }
  0xd7   : > { %v504_v3 = vshrl.u32 (!%p2684_p10), %v503_v2, 7  ;;  %v506_v4 = vand.u32 (!%p2684_p10), 127, %v503_v2 }
  0xd9   : > { %vm507_vm1 = vcmp.le.s32.totalorder (!%p2684_p10), %v506_v4, %v504_v3 }
  0xda   : > { %v508_v6 = vsel (!%p2684_p10), %vm507_vm1, 0.0, %v3626_v5 }
  0xdb   : > { %510 = vst.msk [vmem:[#allocation3] sm:$0xff] (!%p2684_p10), %vm509_vm0, %v508_v6 }
  0xdd PF: > { %v511_v7 = vld [vmem:[%s3954_s25] sm:$0xff]  ;;  %v3627_v13 = vmov 0   ;;  %v3628_v14 = vmov 0.0   ;;  %v512_v22 = vld [vmem:[%s3954_s25 + $0x8] sm:$0xf]  ;;  %v4003_v60 = vld [vmem:[#allocation2] sm:$0xff]  ;;  %v925_v4 = vlaneseq }
  0xde   : > { %v513_v8 = vld [vmem:[%s3954_s25 + $0x20] sm:$0xff]  ;;  %873 = vmatprep.mubr.bf16.mxu0 %v3627_v13  ;;  %2927 = vmatprep.subr.bf16.mxu1 %v3628_v14  ;;  %v514_v23 = vld [vmem:[%s3954_s25 + $0x28] sm:$0xf]  ;;  %v4005_v61 = vld [vmem:[#allocation2 + $0x8] sm:$0xff]  ;;  %vm3629_vm2 = vmmov 0   ;;  %vm1058_vm3 = vcmask 1043456  }
  0xdf   : > { %v515_v9 = vld [vmem:[%s3954_s25 + $0x40] sm:$0xff]  ;;  %v2686_v10 = vcombine.high %v511_v7, %v513_v8  ;;  %v2685_v11 = vcombine.low %v511_v7, %v513_v8  ;;  %v516_v24 = vld [vmem:[%s3954_s25 + $0x48] sm:$0xf]  ;;  %v2687_v25 = vcombine.low %v512_v22, %v514_v23  ;;  %v710_v2 = vpack.c.bf16 %v4005_v61, %v4003_v60  ;;  %2943 = vmatprep.mubr.msk.bf16.mxu1 %vm3629_vm2, %v3628_v14  ;;  %p2818_p3 = scmp.ne.s32.totalorder %s3602_s30, 1 }
  0xe0   : > { %v517_v12 = vld [vmem:[%s3954_s25 + $0x60] sm:$0xff]  ;;  %v518_v26 = vld [vmem:[%s3954_s25 + $0x68] sm:$0xf]  ;;  %v4022_v5 = vshrl.u32 %v925_v4, 7  ;;  %vm1030_vm4 = vcmask 64512  }
  0xe1   : > { %v2689_v15 = vcombine.high %v515_v9, %v517_v12  ;;  %v519_v16 = vld [vmem:[%s3954_s25 + $0x80] sm:$0xff]  ;;  %841 = vmatprep.subr.bf16.mxu0 %v2686_v10  ;;  %v2688_v18 = vcombine.low %v515_v9, %v517_v12  ;;  %2928 = vmatpush3.bf16.msra.mxu1 %v2687_v25  ;;  %v2690_v30 = vcombine.low %v516_v24, %v518_v26  ;;  %v520_v32 = vld [vmem:[%s3954_s25 + $0x88] sm:$0xf] }
  0xe2   : > { %v521_v17 = vld [vmem:[%s3954_s25 + $0xa0] sm:$0xff]  ;;  %842 = vmatpush1.bf16.msra.mxu0 %v2685_v11  ;;  %2929 = vmatprep.subr.bf16.mxu1 %v3628_v14  ;;  %v522_v33 = vld [vmem:[%s3954_s25 + $0xa8] sm:$0xf]  ;;  %v935_v6 = vsub.s32 1, %v4022_v5  ;;  %v927_v9 = vsub.s32 0, %v4022_v5  ;;  %v943_v25 = vsub.s32 2, %v4022_v5 }
  0xe3   : > { %843 = vmatprep.subr.bf16.mxu0 %v2689_v15  ;;  %v2692_v19 = vcombine.high %v519_v16, %v521_v17  ;;  %v523_v20 = vld [vmem:[%s3954_s25 + $0xc0] sm:$0xff]  ;;  %v2691_v27 = vcombine.low %v519_v16, %v521_v17  ;;  %v524_v37 = vld [vmem:[%s3954_s25 + $0xc8] sm:$0xf]  ;;  %v2693_v40 = vcombine.low %v520_v32, %v522_v33 }
  0xe4   : > { %v525_v21 = vld [vmem:[%s3954_s25 + $0xe0] sm:$0xff]  ;;  %v526_v38 = vld [vmem:[%s3954_s25 + $0xe8] sm:$0xf] }
  0xe5   : > { %v2695_v28 = vcombine.high %v523_v20, %v525_v21  ;;  %v527_v29 = vld [vmem:[%s3954_s25 + $0x100] sm:$0xff]  ;;  %v2694_v34 = vcombine.low %v523_v20, %v525_v21  ;;  %2930 = vmatpush3.bf16.msra.mxu1 %v2690_v30  ;;  %v528_v44 = vld [vmem:[%s3954_s25 + $0x108] sm:$0xf]  ;;  %v2696_v47 = vcombine.low %v524_v37, %v526_v38 }
  0xe6   : > { %844 = vmatpush1.bf16.msra.mxu0 %v2688_v18  ;;  %v529_v31 = vld [vmem:[%s3954_s25 + $0x120] sm:$0xff]  ;;  %2931 = vmatprep.subr.bf16.mxu1 %v3628_v14  ;;  %v530_v45 = vld [vmem:[%s3954_s25 + $0x128] sm:$0xf] }
  0xe7   : > { %845 = vmatprep.subr.bf16.mxu0 %v2692_v19  ;;  %v531_v35 = vld [vmem:[%s3954_s25 + $0x140] sm:$0xff]  ;;  %v2698_v39 = vcombine.high %v527_v29, %v529_v31  ;;  %v2697_v41 = vcombine.low %v527_v29, %v529_v31  ;;  %v532_v51 = vld [vmem:[%s3954_s25 + $0x148] sm:$0xf]  ;;  %v2699_v54 = vcombine.low %v528_v44, %v530_v45 }
  0xe8   : > { %v533_v36 = vld [vmem:[%s3954_s25 + $0x160] sm:$0xff]  ;;  %v534_v52 = vld [vmem:[%s3954_s25 + $0x168] sm:$0xf] }
  0xe9   : > { %v535_v42 = vld [vmem:[%s3954_s25 + $0x180] sm:$0xff]  ;;  %v2701_v46 = vcombine.high %v531_v35, %v533_v36  ;;  %2932 = vmatpush3.bf16.msra.mxu1 %v2693_v40  ;;  %v2700_v48 = vcombine.low %v531_v35, %v533_v36  ;;  %v536_v56 = vld [vmem:[%s3954_s25 + $0x188] sm:$0xf]  ;;  %v2702_v59 = vcombine.low %v532_v51, %v534_v52 }
  0xea   : > { %846 = vmatpush1.bf16.msra.mxu0 %v2691_v27  ;;  %v537_v43 = vld [vmem:[%s3954_s25 + $0x1a0] sm:$0xff]  ;;  %2933 = vmatprep.subr.bf16.mxu1 %v3628_v14  ;;  %v538_v57 = vld [vmem:[%s3954_s25 + $0x1a8] sm:$0xf] }
  0xeb   : > { %847 = vmatprep.subr.bf16.mxu0 %v2695_v28  ;;  %v539_v49 = vld [vmem:[%s3954_s25 + $0x1c0] sm:$0xff]  ;;  %v2704_v53 = vcombine.high %v535_v42, %v537_v43  ;;  %v2703_v55 = vcombine.low %v535_v42, %v537_v43  ;;  %v540_v63 = vld [vmem:[%s3954_s25 + $0x1c8] sm:$0xf]  ;;  %v2705_v1 = vcombine.low %v536_v56, %v538_v57 }
  0xec   : > { %v541_v50 = vld [vmem:[%s3954_s25 + $0x1e0] sm:$0xff]  ;;  %v542_v0 = vld [vmem:[%s3954_s25 + $0x1e8] sm:$0xf] }
  0xed   : > { %2934 = vmatpush3.bf16.msra.mxu1 %v2696_v47  ;;  %v2707_v58 = vcombine.high %v539_v49, %v541_v50  ;;  %v2706_v62 = vcombine.low %v539_v49, %v541_v50  ;;  %v2708_v3 = vcombine.low %v540_v63, %v542_v0  ;;  %v4026_v7 = vld [vmem:[%s3964_s27] sm:$0xff]  ;;  %v562_v0 = vld [vmem:[%s3954_s25 + $0x74] sm:$0xf] }
  0xee   : > { %848 = vmatpush1.bf16.msra.mxu0 %v2694_v34  ;;  %2935 = vmatprep.subr.bf16.mxu1 %v3628_v14  ;;  %v936_v8 = vrot.slane %v4026_v7, %v935_v6  ;;  %v928_v16 = vrot.slane %v4026_v7, %v927_v9  ;;  %v944_v26 = vrot.slane %v4026_v7, %v943_v25  ;;  %v949_v35 = vld [vmem:[#allocation3] sm:$0xff] }
  0xef   : > { %849 = vmatprep.subr.bf16.mxu0 %v2698_v39 }
  0xf1   : > { %2936 = vmatpush3.bf16.msra.mxu1 %v2699_v54 }
  0xf2   : > { %850 = vmatpush1.bf16.msra.mxu0 %v2697_v41  ;;  %2937 = vmatprep.subr.bf16.mxu1 %v3628_v14 }
  0xf3   : > { %851 = vmatprep.subr.bf16.mxu0 %v2701_v46 }
  0xf5   : > { %2938 = vmatpush3.bf16.msra.mxu1 %v2702_v59  ;;  %v560_v59 = vld [vmem:[%s3954_s25 + $0x34] sm:$0xf] }
  0xf6   : > { %852 = vmatpush1.bf16.msra.mxu0 %v2700_v48  ;;  %2939 = vmatprep.subr.bf16.mxu1 %v3628_v14 }
  0xf7   : > { %853 = vmatprep.subr.bf16.mxu0 %v2704_v53 }
  0xf9   : > { %2940 = vmatpush3.bf16.msra.mxu1 %v2705_v1 }
  0xfa   : > { %854 = vmatpush1.bf16.msra.mxu0 %v2703_v55  ;;  %2941 = vmatprep.subr.bf16.mxu1 %v3628_v14 }
  0xfb   : > { %855 = vmatprep.subr.bf16.mxu0 %v2707_v58  ;;  %v559_v58 = vld [vmem:[%s3954_s25 + $0x14] sm:$0xf] }
  0xfc   : > { %v2711_v63 = vcombine.low %v559_v58, %v560_v59  ;;  %v545_v58 = vld [vmem:[%s3954_s25 + $0x4c] sm:$0xff] }
  0xfd   : > { %2942 = vmatpush3.bf16.msra.mxu1 %v2708_v3  ;;  %v564_v3 = vld [vmem:[%s3954_s25 + $0xb4] sm:$0xf] }
  0xfe   : > { %856 = vmatpush1.bf16.msra.mxu0 %v2706_v62  ;;  %2947 = vmatprep.subr.bf16.mxu1 %v3628_v14  ;;  %v561_v62 = vld [vmem:[%s3954_s25 + $0x54] sm:$0xf] }
  0xff   : > { %2971 = vmatprep.subr.bf16.mxu0 %v3628_v14  ;;  %v2712_v1 = vcombine.low %v561_v62, %v562_v0  ;;  %v547_v0 = vld [vmem:[%s3954_s25 + $0x8c] sm:$0xff] }
 0x100   : > { %2944 = vmatmul.mubr.bf16.vlgmr.msra.gmra.mrb[0].mxu1 %v710_v2 }
 0x101   : > { %874 = vmatmul.mubr.bf16.vlgmr.msra.gmra.mrb[0].mxu0 %v710_v2  ;;  %2949 = vmatprep.mubr.msk.bf16.mxu1 %vm3629_vm2, %v3628_v14  ;;  %v563_v2 = vld [vmem:[%s3954_s25 + $0x94] sm:$0xf] }
 0x102   : > { %2987 = vmatprep.mubr.msk.bf16.mxu0 %vm3629_vm2, %v3628_v14  ;;  %2972 = vmatpush3.bf16.msra.mxu0 %v2711_v63  ;;  %v2713_v4 = vcombine.low %v563_v2, %v564_v3  ;;  %v546_v63 = vld [vmem:[%s3954_s25 + $0x6c] sm:$0xff]  ;;  %v575_v3 = vld [vmem:[%s3954_s25 + $0x18] sm:$0xf] }
 0x103   : > { %2973 = vmatprep.subr.bf16.mxu0 %v3628_v14  ;;  %v548_v2 = vld [vmem:[%s3954_s25 + $0xac] sm:$0xff] }
 0x106   : > { %2974 = vmatpush3.bf16.msra.mxu0 %v2712_v1  ;;  %v2731_v1 = vcombine.high %v545_v58, %v546_v63 }
 0x107   : > { %2975 = vmatprep.subr.bf16.mxu0 %v3628_v14 }
 0x10a   : > { %2976 = vmatpush3.bf16.msra.mxu0 %v2713_v4  ;;  %v576_v4 = vld [vmem:[%s3954_s25 + $0x38] sm:$0xf] }
 0x10b   : > { %2977 = vmatprep.subr.bf16.mxu0 %v3628_v14 }
 0x1d3   : > { %v918_v27 = vpop.f32.mrb[0].mxu1 }
 0x1d4   : > { %v875_v10 = vpop.f32.mrb[0].mxu0  ;;  %v945_v28 = vadd.f32 %v944_v26, %v918_v27  ;;  %v2945_v29 = vpop.f32.mrb[1].mxu1 }
 0x1d5   : > { %v877_v11 = vpop.f32.mrb[1].mxu0  ;;  %v929_v19 = vadd.f32 %v928_v16, %v875_v10  ;;  %v921_v30 = vpop.f32.mrb[2].mxu1  ;;  %v566_v10 = vld [vmem:[%s3954_s25 + $0xf4] sm:$0xf] }
 0x1d6   : > { %v937_v12 = vadd.f32 %v936_v8, %v877_v11  ;;  %v879_v15 = vpop.f32.mrb[2].mxu0  ;;  %v947_v31 = vpack.c.bf16 %v945_v28, %v945_v28  ;;  %v4045_v32 = vadd.f32 %v944_v26, %v921_v30  ;;  %v2946_v33 = vpop.f32.mrb[3].mxu1  ;;  %v569_v28 = vld [vmem:[%s3954_s25 + $0x154] sm:$0xf] }
 0x1d7   : > { %v881_v17 = vpop.f32.mrb[3].mxu0  ;;  %v931_v21 = vpack.c.bf16 %v929_v19, %v929_v19  ;;  %v930_v23 = vadd.f32 %v928_v16, %v879_v15  ;;  %v568_v15 = vld [vmem:[%s3954_s25 + $0x134] sm:$0xf] }
 0x1d8   : > { %v939_v18 = vpack.c.bf16 %v937_v12, %v937_v12  ;;  %v938_v20 = vadd.f32 %v936_v8, %v881_v17  ;;  %v1060_v34 = vsel %vm1058_vm3, %v947_v31, 0  ;;  %v565_v8 = vld [vmem:[%s3954_s25 + $0xd4] sm:$0xf] }
 0x1d9   : > { %v932_v24 = vpack.c.bf16 %v930_v23, %v930_v23  ;;  %v2714_v11 = vcombine.low %v565_v8, %v566_v10  ;;  %v567_v12 = vld [vmem:[%s3954_s25 + $0x114] sm:$0xf]  ;;  %v577_v8 = vld [vmem:[%s3954_s25 + $0x58] sm:$0xf]  ;;  %v2730_v10 = vcombine.low %v545_v58, %v546_v63 }
 0x1da   : > { %2948 = vmatpush3.bf16.xpose.msra.mxu1 %v939_v18  ;;  %v940_v22 = vpack.c.bf16 %v938_v20, %v938_v20  ;;  %v2715_v16 = vcombine.low %v567_v12, %v568_v15  ;;  %v948_v20 = vpack.c.bf16 %v4045_v32, %v4045_v32  ;;  %v570_v29 = vld [vmem:[%s3954_s25 + $0x174] sm:$0xf]  ;;  %v549_v15 = vld [vmem:[%s3954_s25 + $0xcc] sm:$0xff]  ;;  %v586_v58 = vld [vmem:[%s3954_s25 + $0x178] sm:$0xf] }
 0x1db   : > { %2953 = vmatprep.subr.bf16.mxu1 %v3628_v14  ;;  %2978 = vmatpush3.bf16.msra.mxu0 %v2714_v11  ;;  %v2716_v30 = vcombine.low %v569_v28, %v570_v29  ;;  %v571_v31 = vld [vmem:[%s3954_s25 + $0x194] sm:$0xf]  ;;  %v2733_v11 = vcombine.high %v547_v0, %v548_v2  ;;  %v587_v63 = vld [vmem:[%s3954_s25 + $0x198] sm:$0xf] }
 0x1dc   : > { %2979 = vmatprep.subr.bf16.mxu0 %v3628_v14  ;;  %v1106_v23 = vsel %vm1058_vm3, %v948_v20, 0  ;;  %v572_v32 = vld [vmem:[%s3954_s25 + $0x1b4] sm:$0xf]  ;;  %v552_v20 = vld [vmem:[%s3954_s25 + $0x12c] sm:$0xff] }
 0x1dd   : > { %v2717_v33 = vcombine.low %v571_v31, %v572_v32 }
 0x1df   : > { %2980 = vmatpush3.bf16.msra.mxu0 %v2715_v16  ;;  %v550_v16 = vld [vmem:[%s3954_s25 + $0xec] sm:$0xff] }
 0x1e0   : > { %2981 = vmatprep.subr.bf16.mxu0 %v3628_v14 }
 0x1e1   : > { %2950 = vmatmul.mubr.bf16.vlgmr.msra.gmra.mrb[4].mxu1 %v931_v21 }
 0x1e2   : > { %2954 = vmatpush3.bf16.xpose.msra.mxu1 %v940_v22  ;;  %2955 = vmatprep.mubr.msk.bf16.mxu1 %vm3629_vm2, %v3628_v14 }
 0x1e3   : > { %2959 = vmatprep.subr.bf16.mxu1 %v3628_v14  ;;  %2982 = vmatpush3.bf16.msra.mxu0 %v2716_v30 }
 0x1e4   : > { %2983 = vmatprep.subr.bf16.mxu0 %v3628_v14 }
 0x1e7   : > { %2984 = vmatpush3.bf16.msra.mxu0 %v2717_v33 }
 0x1e8   : > { %2985 = vmatprep.subr.bf16.mxu0 %v3628_v14 }
 0x1e9   : > { %2956 = vmatmul.mubr.bf16.vlgmr.msra.gmra.mrb[8].mxu1 %v932_v24 }
 0x1ea   : > { %2961 = vmatprep.mubr.msk.bf16.mxu1 %vm3629_vm2, %v3628_v14  ;;  %2960 = vmatpush3.bf16.msra.mxu1 %v1060_v34  ;;  %v573_v34 = vld [vmem:[%s3954_s25 + $0x1d4] sm:$0xf] }
 0x1eb   : > { %2965 = vmatprep.subr.bf16.mxu1 %v3628_v14 }
 0x2b4   : > { %v984_v36 = vpop.f32.mrb[4].mxu1 }
 0x2b5   : > { %v985_v37 = vadd.f32 %v984_v36, %v949_v35  ;;  %v2951_v38 = vpop.f32.mrb[5].mxu1 }
 0x2b6   : > { %v987_v39 = vpop.f32.mrb[6].mxu1 }
 0x2b7   : > { %v2952_v40 = vpop.f32.mrb[7].mxu1  ;;  %v1031_v41 = vsel %vm1030_vm4, %v985_v37, -inf }
 0x2b8   : > { %1032 = vmax.xlane.f32.xlu0 %v1031_v41 }
 0x2bc   : > { %v1024_v42 = vpop.f32.mrb[8].mxu1 }
 0x2bd   : > { %v1025_v43 = vadd.f32 %v1024_v42, %v949_v35  ;;  %v2957_v44 = vpop.f32.mrb[9].mxu1  ;;  %v574_v35 = vld [vmem:[%s3954_s25 + $0x1f4] sm:$0xf] }
 0x2be   : > { %v1027_v45 = vpop.f32.mrb[10].mxu1  ;;  %v2718_v36 = vcombine.low %v573_v34, %v574_v35  ;;  %v579_v35 = vld [vmem:[%s3954_s25 + $0x98] sm:$0xf] }
 0x2bf   : > { %v2958_v46 = vpop.f32.mrb[11].mxu1  ;;  %v1034_v47 = vsel %vm1030_vm4, %v1025_v43, -inf }
 0x2c0   : > { %1035 = vmax.xlane.f32.xlu0 %v1034_v47  ;;  %2986 = vmatpush3.bf16.msra.mxu0 %v2718_v36  ;;  %v1151_v46 = vsub.s32 3, %v4022_v5  ;;  %v580_v36 = vld [vmem:[%s3954_s25 + $0xb8] sm:$0xf] }
 0x2c2   : > { %v1152_v47 = vrot.slane %v4026_v7, %v1151_v46 }
 0x345   : > { %v1033_v48 = vpop.xlane.xlu0 %1032 }
 0x346   : > { %v1037_v49 = vsub.f32 %v985_v37, %v1033_v48 }
 0x348   : > { %v1039_v50 = vmul.f32 1.442695, %v1037_v49 }
 0x34a   : > { %3262 = vpow2.f32 %v1039_v50 }
 0x34d   : > { %v1036_v51 = vpop.xlane.xlu0 %1035 }
 0x34e   : > { %v1038_v52 = vsub.f32 %v1025_v43, %v1036_v51 }
 0x350   : > { %v1041_v53 = vmul.f32 1.442695, %v1038_v52 }
 0x352   : > { %3264 = vpow2.f32 %v1041_v53 }
 0x354   : > { %v3263_v54 = vpop.eup %3262 }
 0x355   : > { %v1043_v55 = vsel %vm1030_vm4, %v3263_v54, 0.0 }
 0x356   : > { %1044 = vadd.xlane.f32.xlu1 %v1043_v55 }
 0x35c   : > { %v3265_v56 = vpop.eup %3264 }
 0x35d   : > { %v1046_v57 = vsel %vm1030_vm4, %v3265_v56, 0.0 }
 0x35e   : > { %1047 = vadd.xlane.f32.xlu1 %v1046_v57  ;;  %v544_v57 = vld [vmem:[%s3954_s25 + $0x2c] sm:$0xff] }
 0x3e3   : > { %v1045_v17 = vpop.xlane.xlu1 %1044 }
 0x3e4   : > { %3266 = vrcp.f32 %v1045_v17  ;;  %v2732_v17 = vcombine.low %v547_v0, %v548_v2  ;;  %v588_v0 = vld [vmem:[%s3954_s25 + $0x1b8] sm:$0xf] }
 0x3e5   : > { %v589_v2 = vld [vmem:[%s3954_s25 + $0x1d8] sm:$0xf] }
 0x3eb   : > { %v1048_v18 = vpop.xlane.xlu1 %1047 }
 0x3ec   : > { %3268 = vrcp.f32 %v1048_v18  ;;  %v2735_v18 = vcombine.high %v549_v15, %v550_v16 }
 0x3ee   : > { %v3267_v19 = vpop.eup %3266 }
 0x3ef   : > { %v4070_v21 = vmul.f32 %v3267_v19, %v3263_v54  ;;  %v551_v19 = vld [vmem:[%s3954_s25 + $0x10c] sm:$0xff] }
 0x3f1   : > { %v1053_v22 = vpack.c.bf16 %v4070_v21, %v4070_v21  ;;  %2443 = vst.msk [vmem:[#allocation14] sm:$0xff] (!%p2818_p3), %vm1030_vm4, %v4070_v21 }
 0x3f3   : > { %2962 = vmatmul.mubr.msk.bf16.vlgmr.msra.gmra.mrb[12].mxu1 %vm1030_vm4, %v1053_v22  ;;  %v2734_v22 = vcombine.low %v549_v15, %v550_v16  ;;  %v4153_v15 = vld [vmem:[%s3964_s27 + $0x20] sm:$0xff] }
 0x3f4   : > { %2966 = vmatpush3.bf16.msra.mxu1 %v1106_v23  ;;  %2967 = vmatprep.mubr.msk.bf16.mxu1 %vm3629_vm2, %v3628_v14  ;;  %v2737_v23 = vcombine.high %v551_v19, %v552_v20  ;;  %v1270_v16 = vrot.slane %v4153_v15, %v927_v9  ;;  %v1514_v9 = vsub.s32 6, %v4022_v5 }
 0x3f5   : > { %2991 = vmatprep.subr.bf16.mxu1 %v3628_v14 }
 0x3f6   : > { %v3269_v24 = vpop.eup %3268 }
 0x3f7   : > { %v4079_v26 = vmul.f32 %v3269_v24, %v3265_v56  ;;  %v543_v56 = vld [vmem:[%s3954_s25 + $0xc] sm:$0xff]  ;;  %v2736_v24 = vcombine.low %v551_v19, %v552_v20 }
 0x3f8   : > { %v2728_v59 = vcombine.low %v543_v56, %v544_v57  ;;  %v2729_v62 = vcombine.high %v543_v56, %v544_v57  ;;  %v585_v57 = vld [vmem:[%s3954_s25 + $0x158] sm:$0xf] }
 0x3f9   : > { %v1054_v27 = vpack.c.bf16 %v4079_v26, %v4079_v26  ;;  %2444 = vst.msk [vmem:[#allocation14 + $0x8] sm:$0xff] (!%p2818_p3), %vm1030_vm4, %v4079_v26 }
 0x3fa   : > { %1461 = vmatprep.subr.bf16.mxu0 %v2729_v62  ;;  %v3181_v62 = vld [vmem:[#allocation7] sm:$0xff]  }
 0x3fb   : > { %2968 = vmatmul.mubr.msk.bf16.vlgmr.msra.gmra.mrb[16].mxu1 %vm1030_vm4, %v1054_v27 }
 0x3fc   : > { %3007 = vmatprep.mubr.msk.bf16.mxu1 %vm3629_vm2, %v3628_v14 }
 0x4c6   : > { %v1096_v37 = vpop.f32.mrb[12].mxu1 }
 0x4c7   : > { %v2963_v38 = vpop.f32.mrb[13].mxu1 }
 0x4c8   : > { %v1099_v39 = vpop.f32.mrb[14].mxu1  ;;  %v553_v38 = vld [vmem:[%s3954_s25 + $0x14c] sm:$0xff] }
 0x4c9   : > { %v2964_v40 = vpop.f32.mrb[15].mxu1  ;;  %v554_v39 = vld [vmem:[%s3954_s25 + $0x16c] sm:$0xff] }
 0x4ca   : > { %v2739_v40 = vcombine.high %v553_v38, %v554_v39 }
 0x4ce   : > { %v1142_v41 = vpop.f32.mrb[16].mxu1 }
 0x4cf   : > { %v1148_v42 = vpack.c.bf16 %v1142_v41, %v1096_v37  ;;  %v2969_v43 = vpop.f32.mrb[17].mxu1  ;;  %v2721_v37 = vcombine.low %v579_v35, %v580_v36  ;;  %v2738_v41 = vcombine.low %v553_v38, %v554_v39 }
 0x4d0   : > { %v1145_v44 = vpop.f32.mrb[18].mxu1  ;;  %v582_v43 = vld [vmem:[%s3954_s25 + $0xf8] sm:$0xf] }
 0x4d1   : > { %v2970_v45 = vpop.f32.mrb[19].mxu1  ;;  %2988 = vmatmul.mubr.bf16.vlgmr.msra.gmra.mrb[4].mxu0 %v1148_v42  ;;  %v581_v42 = vld [vmem:[%s3954_s25 + $0xd8] sm:$0xf] }
 0x4d2   : > { %1493 = vmatprep.mubr.bf16.mxu0 %v3627_v13  ;;  %1462 = vmatpush1.bf16.msra.mxu0 %v2728_v59  ;;  %v2722_v44 = vcombine.low %v581_v42, %v582_v43  ;;  %v555_v45 = vld [vmem:[%s3954_s25 + $0x18c] sm:$0xff]  ;;  %v2724_v59 = vcombine.low %v585_v57, %v586_v58 }
 0x4d3   : > { %1463 = vmatprep.subr.bf16.mxu0 %v2731_v1  ;;  %v2725_v1 = vcombine.low %v587_v63, %v588_v0 }
 0x4d6   : > { %1464 = vmatpush1.bf16.msra.mxu0 %v2730_v10 }
 0x4d7   : > { %1465 = vmatprep.subr.bf16.mxu0 %v2733_v11 }
 0x4da   : > { %1466 = vmatpush1.bf16.msra.mxu0 %v2732_v17 }
 0x4db   : > { %1467 = vmatprep.subr.bf16.mxu0 %v2735_v18  ;;  %v1276_v18 = vrot.slane %v4153_v15, %v935_v6  ;;  %v1506_v6 = vsub.s32 5, %v4022_v5 }
 0x4de   : > { %1468 = vmatpush1.bf16.msra.mxu0 %v2734_v22 }
 0x4df   : > { %1469 = vmatprep.subr.bf16.mxu0 %v2737_v23 }
 0x4e2   : > { %1470 = vmatpush1.bf16.msra.mxu0 %v2736_v24 }
 0x4e3   : > { %1471 = vmatprep.subr.bf16.mxu0 %v2739_v40  ;;  %v1282_v40 = vsub.s32 4, %v4022_v5 }
 0x4e6   : > { %1472 = vmatpush1.bf16.msra.mxu0 %v2738_v41  ;;  %v1283_v41 = vrot.slane %v4026_v7, %v1282_v40 }
 0x5a4   : > { %v1235_v48 = vpop.f32.mrb[4].mxu0 }
 0x5a5   : > { %v1236_v49 = vadd.f32 %v1235_v48, %v1152_v47  ;;  %v2989_v50 = vpop.f32.mrb[5].mxu0 }
 0x5a6   : > { %v1238_v51 = vpop.f32.mrb[6].mxu0  ;;  %v583_v50 = vld [vmem:[%s3954_s25 + $0x118] sm:$0xf] }
 0x5a7   : > { %v1239_v52 = vadd.f32 %v1238_v51, %v1152_v47  ;;  %v2990_v53 = vpop.f32.mrb[7].mxu0  ;;  %v1242_v54 = vadd.f32 %v1236_v49, %v4003_v60  ;;  %v2719_v60 = vcombine.low %v575_v3, %v576_v4  ;;  %v556_v47 = vld [vmem:[%s3954_s25 + $0x1ac] sm:$0xff]  ;;  %v584_v51 = vld [vmem:[%s3954_s25 + $0x138] sm:$0xf] }
 0x5a8   : > { %v2741_v48 = vcombine.high %v555_v45, %v556_v47  ;;  %v2740_v49 = vcombine.low %v555_v45, %v556_v47  ;;  %v557_v53 = vld [vmem:[%s3954_s25 + $0x1cc] sm:$0xff]  ;;  %v590_v3 = vld [vmem:[%s3954_s25 + $0x1f8] sm:$0xf] }
 0x5a9   : > { %1244 = vadd.xlane.f32.xlu0 %v1242_v54  ;;  %v1243_v55 = vadd.f32 %v1239_v52, %v4005_v61  ;;  %v578_v61 = vld [vmem:[%s3954_s25 + $0x78] sm:$0xf]  ;;  %2992 = vmatpush3.bf16.msra.mxu1 %v2719_v60  ;;  %v2723_v52 = vcombine.low %v583_v50, %v584_v51  ;;  %v2726_v4 = vcombine.low %v589_v2, %v590_v3 }
 0x5aa   : > { %v2720_v12 = vcombine.low %v577_v8, %v578_v61  ;;  %2993 = vmatprep.subr.bf16.mxu1 %v3628_v14  ;;  %1473 = vmatprep.subr.bf16.mxu0 %v2741_v48 }
 0x5ab   : > { %1246 = vadd.xlane.f32.xlu1 %v1243_v55  ;;  %1474 = vmatpush1.bf16.msra.mxu0 %v2740_v49 }
 0x5ad   : > { %2994 = vmatpush3.bf16.msra.mxu1 %v2720_v12 }
 0x5ae   : > { %2995 = vmatprep.subr.bf16.mxu1 %v3628_v14 }
 0x5b1   : > { %2996 = vmatpush3.bf16.msra.mxu1 %v2721_v37 }
 0x5b2   : > { %2997 = vmatprep.subr.bf16.mxu1 %v3628_v14 }
 0x5b5   : > { %2998 = vmatpush3.bf16.msra.mxu1 %v2722_v44 }
 0x5b6   : > { %2999 = vmatprep.subr.bf16.mxu1 %v3628_v14 }
 0x5b9   : > { %3000 = vmatpush3.bf16.msra.mxu1 %v2723_v52 }
 0x5ba   : > { %3001 = vmatprep.subr.bf16.mxu1 %v3628_v14 }
 0x5bd   : > { %3002 = vmatpush3.bf16.msra.mxu1 %v2724_v59 }
 0x5be   : > { %3003 = vmatprep.subr.bf16.mxu1 %v3628_v14 }
 0x5c1   : > { %3004 = vmatpush3.bf16.msra.mxu1 %v2725_v1 }
 0x5c2   : > { %3005 = vmatprep.subr.bf16.mxu1 %v3628_v14 }
 0x5c5   : > { %3006 = vmatpush3.bf16.msra.mxu1 %v2726_v4 }
 0x5c6   : > { %3011 = vmatprep.subr.bf16.mxu1 %v3628_v14 }
 0x636   : > { %v1245_v27 = vpop.xlane.xlu0 %1244 }
 0x637   : > { %v1249_v28 = vmul.f32 0.0078125, %v1245_v27 }
 0x638   : > { %v1247_v29 = vpop.xlane.xlu1 %1246 }
 0x639   : > { %v4117_v30 = vsub.f32 %v1242_v54, %v1249_v28  ;;  %v1250_v31 = vmul.f32 0.0078125, %v1247_v29  ;;  %v558_v54 = vld [vmem:[%s3954_s25 + $0x1ec] sm:$0xff] }
 0x63a   : > { %v2742_v56 = vcombine.low %v557_v53, %v558_v54 }
 0x63b   : > { %v4119_v32 = vsub.f32 %v1243_v55, %v1250_v31  ;;  %v1253_v33 = vmul.f32 %v4117_v30, %v4117_v30  ;;  %v2743_v55 = vcombine.high %v557_v53, %v558_v54 }
 0x63d   : > { %1255 = vadd.xlane.f32.xlu0 %v1253_v33  ;;  %v1254_v34 = vmul.f32 %v4119_v32, %v4119_v32  ;;  %1475 = vmatprep.subr.bf16.mxu0 %v2743_v55 }
 0x63e   : > { %1476 = vmatpush1.bf16.msra.mxu0 %v2742_v56 }
 0x63f   : > { %1257 = vadd.xlane.f32.xlu1 %v1254_v34  ;;  %3035 = vmatprep.subr.bf16.mxu0 %v3628_v14 }
 0x641   : > { %1494 = vmatmul.mubr.bf16.vlgmr.msra.gmra.mrb[8].mxu0 %v3181_v62 }
 0x642   : > { %3051 = vmatprep.mubr.msk.bf16.mxu0 %vm3629_vm2, %v3628_v14 }
 0x6ca   : > { %v1256_v60 = vpop.xlane.xlu0 %1255 }
 0x6cb   : > { %v1259_v8 = vmul.f32 0.0078125, %v1256_v60 }
 0x6cc   : > { %v1258_v61 = vpop.xlane.xlu1 %1257 }
 0x6cd   : > { %v1261_v10 = vadd.f32 1e-05, %v1259_v8  ;;  %v1260_v11 = vmul.f32 0.0078125, %v1258_v61 }
 0x6cf   : > { %3270 = vrsqrt.f32 %v1261_v10  ;;  %v1262_v12 = vadd.f32 1e-05, %v1260_v11 }
 0x6d1   : > { %3272 = vrsqrt.f32 %v1262_v12 }
 0x6d9   : > { %v3271_v17 = vpop.eup %3270 }
 0x6da   : > { %v1265_v19 = vmul.f32 %v3271_v17, %v4117_v30  ;;  %v1507_v30 = vrot.slane %v4026_v7, %v1506_v6 }
 0x6db   : > { %v3273_v20 = vpop.eup %3272 }
 0x6dc   : > { %v1266_v22 = vmul.f32 %v3273_v20, %v4119_v32  ;;  %v1271_v23 = vmul.f32 %v1270_v16, %v1265_v19  ;;  %v1515_v32 = vrot.slane %v4026_v7, %v1514_v9  ;;  %v592_v19 = vld [vmem:[%s3954_s25 + $0x3c] sm:$0xf] }
 0x6dd   : > { %v593_v20 = vld [vmem:[%s3954_s25 + $0x5c] sm:$0xf] }
 0x6de   : > { %v1272_v24 = vmul.f32 %v1270_v16, %v1266_v22  ;;  %v4163_v27 = vadd.f32 %v1276_v18, %v1271_v23  ;;  %v594_v23 = vld [vmem:[%s3954_s25 + $0x7c] sm:$0xf] }
 0x6e0   : > { %v4165_v28 = vadd.f32 %v1276_v18, %v1272_v24  ;;  %v591_v18 = vld [vmem:[%s3954_s25 + $0x1c] sm:$0xf]  ;;  %v2747_v24 = vcombine.low %v593_v20, %v594_v23  ;;  %v3184_v20 = vld [vmem:[%s3960_s22 + $0x4] ss:$16 sps:$4 sm:$0xff]  }
 0x6e1   : > { %v2746_v22 = vcombine.low %v591_v18, %v592_v19  ;;  %v3182_v19 = vld [vmem:[%s3960_s22] ss:$16 sps:$4 sm:$0xff]   ;;  %v3187_v23 = vld [vmem:[%s3960_s22 + $0xc] ss:$16 sps:$4 sm:$0xff]  }
 0x6e2   : > { %v1279_v29 = vpack.c.bf16 %v4165_v28, %v4163_v27 }
 0x6e3   : > { %3036 = vmatpush3.bf16.msra.mxu0 %v2746_v22  ;;  %v3185_v22 = vld [vmem:[%s3960_s22 + $0x8] ss:$16 sps:$4 sm:$0xff]  }
 0x6e4   : > { %3008 = vmatmul.mubr.bf16.vlgmr.msra.gmra.mrb[20].mxu1 %v1279_v29  ;;  %3037 = vmatprep.subr.bf16.mxu0 %v3628_v14  ;;  %v595_v29 = vld [vmem:[%s3954_s25 + $0x9c] sm:$0xf] }
 0x6e5   : > { %3013 = vmatprep.mubr.msk.bf16.mxu1 %vm3629_vm2, %v3628_v14 }
 0x6e7   : > { %3038 = vmatpush3.bf16.msra.mxu0 %v2747_v24  ;;  %v3193_v24 = vld [vmem:[%s3960_s22 + $0x2c] ss:$16 sps:$4 sm:$0xff]  }
 0x6e8   : > { %3039 = vmatprep.subr.bf16.mxu0 %v3628_v14 }
 0x714   : > { %v1495_v31 = vpop.f32.mrb[8].mxu0 }
 0x715   : > { %v1508_v33 = vadd.f32 %v1507_v30, %v1495_v31  ;;  %v1497_v34 = vpop.f32.mrb[9].mxu0 }
 0x716   : > { %v1499_v35 = vpop.f32.mrb[10].mxu0  ;;  %v1516_v50 = vadd.f32 %v1515_v32, %v1497_v34 }
 0x717   : > { %v1510_v36 = vpack.c.bf16 %v1508_v33, %v1508_v33  ;;  %v1509_v37 = vadd.f32 %v1507_v30, %v1499_v35  ;;  %v1501_v38 = vpop.f32.mrb[11].mxu0  ;;  %v596_v30 = vld [vmem:[%s3954_s25 + $0xbc] sm:$0xf] }
 0x718   : > { %v4179_v39 = vadd.f32 %v1515_v32, %v1501_v38  ;;  %v1518_v52 = vpack.c.bf16 %v1516_v50, %v1516_v50  ;;  %v2748_v31 = vcombine.low %v595_v29, %v596_v30  ;;  %v597_v32 = vld [vmem:[%s3954_s25 + $0xdc] sm:$0xf]  ;;  %v3188_v29 = vld [vmem:[%s3960_s22 + $0x20] ss:$16 sps:$4 sm:$0xff]  }
 0x719   : > { %3012 = vmatpush3.bf16.xpose.msra.mxu1 %v1510_v36  ;;  %v1511_v49 = vpack.c.bf16 %v1509_v37, %v1509_v37  ;;  %v598_v33 = vld [vmem:[%s3954_s25 + $0xfc] sm:$0xf] }
 0x71a   : > { %3017 = vmatprep.subr.bf16.mxu1 %v3628_v14  ;;  %v1628_v54 = vsel %vm1058_vm3, %v1518_v52, 0  ;;  %3040 = vmatpush3.bf16.msra.mxu0 %v2748_v31  ;;  %v2749_v34 = vcombine.low %v597_v32, %v598_v33  ;;  %v599_v35 = vld [vmem:[%s3954_s25 + $0x11c] sm:$0xf] }
 0x71b   : > { %3041 = vmatprep.subr.bf16.mxu0 %v3628_v14  ;;  %v600_v36 = vld [vmem:[%s3954_s25 + $0x13c] sm:$0xf] }
 0x71c   : > { %v2750_v37 = vcombine.low %v599_v35, %v600_v36  ;;  %v601_v50 = vld [vmem:[%s3954_s25 + $0x15c] sm:$0xf] }
 0x71e   : > { %3042 = vmatpush3.bf16.msra.mxu0 %v2749_v34 }
 0x71f   : > { %3043 = vmatprep.subr.bf16.mxu0 %v3628_v14 }
 0x722   : > { %3044 = vmatpush3.bf16.msra.mxu0 %v2750_v37  ;;  %v3196_v37 = vld [vmem:[%s3960_s22 + $0x44] ss:$16 sps:$4 sm:$0xff]  }
 0x723   : > { %3045 = vmatprep.subr.bf16.mxu0 %v3628_v14 }
 0x7b7   : > { %v1366_v42 = vpop.f32.mrb[20].mxu1 }
 0x7b8   : > { %v1367_v43 = vadd.f32 %v1366_v42, %v1283_v41  ;;  %v3009_v44 = vpop.f32.mrb[21].mxu1 }
 0x7b9   : > { %v1369_v45 = vpop.f32.mrb[22].mxu1 }
 0x7ba   : > { %v1373_v47 = vpack.c.bf16 %v1367_v43, %v1367_v43  ;;  %v3010_v48 = vpop.f32.mrb[23].mxu1  ;;  %v1370_v51 = vadd.f32 %v1369_v45, %v1283_v41  ;;  %v1519_v43 = vpack.c.bf16 %v4179_v39, %v4179_v39 }
 0x7bc   : > { %3014 = vmatmul.mubr.bf16.vlgmr.msra.gmra.mrb[24].mxu1 %v1373_v47  ;;  %v1374_v53 = vpack.c.bf16 %v1370_v51, %v1370_v51  ;;  %v1674_v47 = vsel %vm1058_vm3, %v1519_v43, 0  ;;  %v602_v51 = vld [vmem:[%s3954_s25 + $0x17c] sm:$0xf]  ;;  %v3202_v43 = vld [vmem:[%s3960_s22 + $0x64] ss:$16 sps:$4 sm:$0xff]  }
 0x7bd   : > { %3018 = vmatpush3.bf16.xpose.msra.mxu1 %v1511_v49  ;;  %3019 = vmatprep.mubr.msk.bf16.mxu1 %vm3629_vm2, %v3628_v14  ;;  %v2751_v52 = vcombine.low %v601_v50, %v602_v51  ;;  %v3211_v50 = vld [vmem:[%s3960_s22 + $0x8c] ss:$16 sps:$4 sm:$0xff]   ;;  %v3206_v51 = vld [vmem:[%s3960_s22 + $0x80] ss:$16 sps:$4 sm:$0xff]  }
 0x7be   : > { %3023 = vmatprep.subr.bf16.mxu1 %v3628_v14 }
 0x7bf   : > { %3046 = vmatpush3.bf16.msra.mxu0 %v2751_v52  ;;  %v3209_v52 = vld [vmem:[%s3960_s22 + $0x88] ss:$16 sps:$4 sm:$0xff]  }
 0x7c0   : > { %3047 = vmatprep.subr.bf16.mxu0 %v3628_v14 }
 0x7c4   : > { %3020 = vmatmul.mubr.bf16.vlgmr.msra.gmra.mrb[28].mxu1 %v1374_v53  ;;  %v603_v53 = vld [vmem:[%s3954_s25 + $0x19c] sm:$0xf] }
 0x7c5   : > { %3024 = vmatpush3.bf16.msra.mxu1 %v1628_v54  ;;  %3025 = vmatprep.mubr.msk.bf16.mxu1 %vm3629_vm2, %v3628_v14  ;;  %v604_v54 = vld [vmem:[%s3954_s25 + $0x1bc] sm:$0xf] }
 0x7c6   : > { %3029 = vmatprep.subr.bf16.mxu1 %v3628_v14 }
 0x88f   : > { %v1554_v55 = vpop.f32.mrb[24].mxu1 }
 0x890   : > { %v3015_v56 = vpop.f32.mrb[25].mxu1  ;;  %v1600_v57 = vsel %vm1030_vm4, %v1554_v55, -inf }
 0x891   : > { %1601 = vmax.xlane.f32.xlu0 %v1600_v57  ;;  %v1557_v58 = vpop.f32.mrb[26].mxu1  ;;  %v605_v56 = vld [vmem:[%s3954_s25 + $0x1dc] sm:$0xf] }
 0x892   : > { %v3016_v59 = vpop.f32.mrb[27].mxu1  ;;  %v606_v57 = vld [vmem:[%s3954_s25 + $0x1fc] sm:$0xf] }
 0x893   : > { %v2753_v58 = vcombine.low %v605_v56, %v606_v57  ;;  %v3215_v56 = vld [vmem:[%s3960_s22 + $0xa8] ss:$16 sps:$4 sm:$0xff]   ;;  %v3220_v57 = vld [vmem:[%s3960_s22 + $0xc4] ss:$16 sps:$4 sm:$0xff]  }
 0x897   : > { %v1594_v62 = vpop.f32.mrb[28].mxu1 }
 0x898   : > { %v3021_v63 = vpop.f32.mrb[29].mxu1  ;;  %v1603_v0 = vsel %vm1030_vm4, %v1594_v62, -inf }
 0x899   : > { %1604 = vmax.xlane.f32.xlu1 %v1603_v0  ;;  %v1597_v1 = vpop.f32.mrb[30].mxu1 }
 0x89a   : > { %v3022_v2 = vpop.f32.mrb[31].mxu1 }
 0x91e   : > { %v1602_v3 = vpop.xlane.xlu0 %1601 }
 0x91f   : > { %v1606_v4 = vsub.f32 %v1554_v55, %v1602_v3  ;;  %v2752_v55 = vcombine.low %v603_v53, %v604_v54  ;;  %v3214_v53 = vld [vmem:[%s3960_s22 + $0xa4] ss:$16 sps:$4 sm:$0xff]   ;;  %v3217_v54 = vld [vmem:[%s3960_s22 + $0xac] ss:$16 sps:$4 sm:$0xff]  }
 0x921   : > { %v1608_v60 = vmul.f32 1.442695, %v1606_v4  ;;  %3048 = vmatpush3.bf16.msra.mxu0 %v2752_v55  ;;  %v3212_v55 = vld [vmem:[%s3960_s22 + $0xa0] ss:$16 sps:$4 sm:$0xff]  }
 0x922   : > { %3049 = vmatprep.subr.bf16.mxu0 %v3628_v14 }
 0x923   : > { %3274 = vpow2.f32 %v1608_v60 }
 0x925   : > { %3050 = vmatpush3.bf16.msra.mxu0 %v2753_v58  ;;  %v3223_v58 = vld [vmem:[%s3960_s22 + $0xcc] ss:$16 sps:$4 sm:$0xff]  }
 0x926   : > { %v1605_v8 = vpop.xlane.xlu1 %1604  ;;  %2066 = vmatprep.subr.bf16.mxu0 %v3187_v23 }
 0x927   : > { %v1607_v61 = vsub.f32 %v1594_v62, %v1605_v8 }
 0x929   : > { %v1610_v10 = vmul.f32 1.442695, %v1607_v61 }
 0x92b   : > { %3276 = vpow2.f32 %v1610_v10 }
 0x92d   : > { %v3275_v11 = vpop.eup %3274 }
 0x92e   : > { %v1612_v12 = vsel %vm1030_vm4, %v3275_v11, 0.0 }
 0x92f   : > { %1613 = vadd.xlane.f32.xlu0 %v1612_v12 }
 0x935   : > { %v3277_v16 = vpop.eup %3276 }
 0x936   : > { %v1615_v17 = vsel %vm1030_vm4, %v3277_v16, 0.0 }
 0x937   : > { %1616 = vadd.xlane.f32.xlu1 %v1615_v17 }
 0x9bc   : > { %v1614_v38 = vpop.xlane.xlu0 %1613 }
 0x9bd   : > { %3278 = vrcp.f32 %v1614_v38  ;;  %v3199_v38 = vld [vmem:[%s3960_s22 + $0x4c] ss:$16 sps:$4 sm:$0xff]  }
 0x9c4   : > { %v1617_v41 = vpop.xlane.xlu1 %1616 }
 0x9c5   : > { %3280 = vrcp.f32 %v1617_v41  ;;  %v3194_v41 = vld [vmem:[%s3960_s22 + $0x40] ss:$16 sps:$4 sm:$0xff]  }
 0x9c7   : > { %v3279_v42 = vpop.eup %3278 }
 0x9c8   : > { %v4214_v44 = vmul.f32 %v3279_v42, %v3275_v11  ;;  %v3197_v42 = vld [vmem:[%s3960_s22 + $0x48] ss:$16 sps:$4 sm:$0xff]  }
 0x9ca   : > { %v1622_v45 = vpack.c.bf16 %v4214_v44, %v4214_v44  ;;  %2445 = vst.msk [vmem:[#allocation16] sm:$0xff] (!%p2818_p3), %vm1030_vm4, %v4214_v44 }
 0x9cc   : > { %3026 = vmatmul.mubr.msk.bf16.vlgmr.msra.gmra.mrb[32].mxu1 %vm1030_vm4, %v1622_v45  ;;  %v3205_v45 = vld [vmem:[%s3960_s22 + $0x6c] ss:$16 sps:$4 sm:$0xff]  }
 0x9cd   : > { %3030 = vmatpush3.bf16.msra.mxu1 %v1674_v47  ;;  %3031 = vmatprep.mubr.msk.bf16.mxu1 %vm3629_vm2, %v3628_v14  ;;  %v4238_v14 = vsub.s32 7, %v4022_v5  ;;  %v3200_v47 = vld [vmem:[%s3960_s22 + $0x60] ss:$16 sps:$4 sm:$0xff]  }
 0x9ce   : > { %2023 = vmatprep.subr.bf16.mxu1 %v3184_v20 }
 0x9cf   : > { %v3281_v48 = vpop.eup %3280  ;;  %v1720_v8 = vrot.slane %v4026_v7, %v4238_v14  ;;  %v3190_v7 = vld [vmem:[%s3960_s22 + $0x24] ss:$16 sps:$4 sm:$0xff]  }
 0x9d0   : > { %v4222_v49 = vmul.f32 %v3281_v48, %v3277_v16  ;;  %v3203_v48 = vld [vmem:[%s3960_s22 + $0x68] ss:$16 sps:$4 sm:$0xff]  }
 0x9d2   : > { %v1623_v39 = vpack.c.bf16 %v4222_v49, %v4222_v49  ;;  %2446 = vst.msk [vmem:[#allocation16 + $0x8] sm:$0xff] (!%p2818_p3), %vm1030_vm4, %v4222_v49 }
 0x9d4   : > { %3032 = vmatmul.mubr.msk.bf16.vlgmr.msra.gmra.mrb[36].mxu1 %vm1030_vm4, %v1623_v39  ;;  %v3208_v39 = vld [vmem:[%s3960_s22 + $0x84] ss:$16 sps:$4 sm:$0xff]  }
 0x9d5   : > { %2055 = vmatprep.mubr.bf16.mxu1 %v3627_v13  ;;  %2024 = vmatpush1.bf16.msra.mxu1 %v3182_v19  ;;  %v1843_v19 = vrot.slane %v4153_v15, %v1151_v46  ;;  %v3235_v46 = vld [vmem:[%s3962_s17 + $0xc8] sm:$0xff]  }
 0x9d6   : > { %2025 = vmatprep.subr.bf16.mxu1 %v3190_v7 }
 0x9d9   : > { %2026 = vmatpush1.bf16.msra.mxu1 %v3188_v29  ;;  %v3233_v29 = vld [vmem:[%s3962_s17 + $0x80] sm:$0xff]  }
 0x9da   : > { %2027 = vmatprep.subr.bf16.mxu1 %v3196_v37  ;;  %v3243_v37 = vld [vmem:[%s3962_s17 + $0xd8] sm:$0xff]  }
 0x9dd   : > { %2028 = vmatpush1.bf16.msra.mxu1 %v3194_v41  ;;  %v3245_v41 = vld [vmem:[%s3962_s17 + $0x98] sm:$0xff]  }
 0x9de   : > { %2029 = vmatprep.subr.bf16.mxu1 %v3202_v43  ;;  %v3247_v43 = vld [vmem:[%s3962_s17 + $0xe0] sm:$0xff]  }
 0x9e1   : > { %2030 = vmatpush1.bf16.msra.mxu1 %v3200_v47  ;;  %v3249_v47 = vld [vmem:[%s3962_s17 + $0xa0] sm:$0xff]  }
 0x9e2   : > { %2031 = vmatprep.subr.bf16.mxu1 %v3208_v39  ;;  %v3251_v39 = vld [vmem:[%s3962_s17 + $0xe8] sm:$0xff]  }
 0x9e5   : > { %2032 = vmatpush1.bf16.msra.mxu1 %v3206_v51  ;;  %v3253_v51 = vld [vmem:[%s3962_s17 + $0xa8] sm:$0xff]  }
 0x9e6   : > { %2033 = vmatprep.subr.bf16.mxu1 %v3214_v53  ;;  %v3255_v53 = vld [vmem:[%s3962_s17 + $0xf0] sm:$0xff]  }
 0x9e9   : > { %2034 = vmatpush1.bf16.msra.mxu1 %v3212_v55  ;;  %v3257_v55 = vld [vmem:[%s3962_s17 + $0xb0] sm:$0xff]  }
 0x9ea   : > { %2035 = vmatprep.subr.bf16.mxu1 %v3220_v57  ;;  %v3259_v57 = vld [vmem:[%s3962_s17 + $0xf8] sm:$0xff]  }
 0xa9f   : > { %v1664_v59 = vpop.f32.mrb[32].mxu1 }
 0xaa0   : > { %v3027_v62 = vpop.f32.mrb[33].mxu1 }
 0xaa1   : > { %v1667_v63 = vpop.f32.mrb[34].mxu1  ;;  %v3221_v62 = vld [vmem:[%s3960_s22 + $0xc8] ss:$16 sps:$4 sm:$0xff]  }
 0xaa2   : > { %v3028_v0 = vpop.f32.mrb[35].mxu1  ;;  %v3226_v63 = vld [vmem:[%s3960_s22 + $0xe4] ss:$16 sps:$4 sm:$0xff]  }
 0xaa3   : > { %v3229_v0 = vld [vmem:[%s3960_s22 + $0xec] ss:$16 sps:$4 sm:$0xff]  }
 0xaa7   : > { %v1710_v1 = vpop.f32.mrb[36].mxu1 }
 0xaa8   : > { %v1716_v2 = vpack.c.bf16 %v1710_v1, %v1664_v59  ;;  %v3033_v3 = vpop.f32.mrb[37].mxu1  ;;  %v3218_v59 = vld [vmem:[%s3960_s22 + $0xc0] ss:$16 sps:$4 sm:$0xff]  }
 0xaa9   : > { %v1713_v4 = vpop.f32.mrb[38].mxu1  ;;  %2036 = vmatpush1.bf16.msra.mxu1 %v3218_v59  ;;  %v3224_v1 = vld [vmem:[%s3960_s22 + $0xe0] ss:$16 sps:$4 sm:$0xff]   ;;  %v3261_v59 = vld [vmem:[%s3962_s17 + $0xb8] sm:$0xff]  }
 0xaaa   : > { %v3034_v60 = vpop.f32.mrb[39].mxu1  ;;  %3052 = vmatmul.mubr.bf16.vlgmr.msra.gmra.mrb[12].mxu0 %v1716_v2  ;;  %v3227_v2 = vld [vmem:[%s3960_s22 + $0xe8] ss:$16 sps:$4 sm:$0xff]   ;;  %2037 = vmatprep.subr.bf16.mxu1 %v3226_v63  ;;  %v3230_v3 = vld [vmem:[%s3962_s17 + $0x40] sm:$0xff]  }
 0xaab   : > { %2098 = vmatprep.mubr.bf16.mxu0 %v3627_v13  ;;  %2067 = vmatpush1.bf16.msra.mxu0 %v3185_v22  ;;  %v3231_v4 = vld [vmem:[%s3962_s17 + $0xc0] sm:$0xff]   ;;  %v705_v63 = vld [vmem:[%s3964_s27 + $0x28] sm:$0xff] }
 0xaac   : > { %2068 = vmatprep.subr.bf16.mxu0 %v3193_v24 }
 0xaad   : > { %2038 = vmatpush1.bf16.msra.mxu1 %v3224_v1  ;;  %v1850_v1 = vrot.slane %v4153_v15, %v4238_v14 }
 0xaae   : > { %2883 = vmatprep.subr.bf16.mxu1 %v3230_v3  ;;  %v1854_v3 = vrot.slane %v705_v63, %v4238_v14 }
 0xb7d   : > { %v1803_v61 = vpop.f32.mrb[12].mxu0 }
 0xb7e   : > { %v1804_v10 = vadd.f32 %v1803_v61, %v1720_v8  ;;  %v3053_v11 = vpop.f32.mrb[13].mxu0 }
 0xb7f   : > { %v1806_v12 = vpop.f32.mrb[14].mxu0 }
 0xb80   : > { %v1807_v16 = vadd.f32 %v1806_v12, %v1720_v8  ;;  %v3054_v17 = vpop.f32.mrb[15].mxu0  ;;  %v1810_v18 = vadd.f32 %v1804_v10, %v4163_v27  ;;  %v3191_v27 = vld [vmem:[%s3960_s22 + $0x28] ss:$16 sps:$4 sm:$0xff]  }
 0xb81   : > { %2069 = vmatpush1.bf16.msra.mxu0 %v3191_v27 }
 0xb82   : > { %1812 = vadd.xlane.f32.xlu0 %v1810_v18  ;;  %v1811_v13 = vadd.f32 %v1807_v16, %v4165_v28  ;;  %2070 = vmatprep.subr.bf16.mxu0 %v3199_v38  ;;  %v1837_v16 = vrot.slane %v4153_v15, %v943_v25  ;;  %v3232_v25 = vld [vmem:[%s3962_s17] sm:$0xff]   ;;  %v3244_v38 = vld [vmem:[%s3962_s17 + $0x18] sm:$0xff]  }
 0xb84   : > { %1814 = vadd.xlane.f32.xlu1 %v1811_v13 }
 0xb85   : > { %2071 = vmatpush1.bf16.msra.mxu0 %v3197_v42  ;;  %v3246_v42 = vld [vmem:[%s3962_s17 + $0x60] sm:$0xff]  }
 0xb86   : > { %2072 = vmatprep.subr.bf16.mxu0 %v3205_v45  ;;  %v3248_v45 = vld [vmem:[%s3962_s17 + $0x20] sm:$0xff]  }
 0xb89   : > { %2073 = vmatpush1.bf16.msra.mxu0 %v3203_v48  ;;  %v3250_v48 = vld [vmem:[%s3962_s17 + $0x68] sm:$0xff]  }
 0xb8a   : > { %2074 = vmatprep.subr.bf16.mxu0 %v3211_v50  ;;  %v3252_v50 = vld [vmem:[%s3962_s17 + $0x28] sm:$0xff]  }
 0xb8d   : > { %2075 = vmatpush1.bf16.msra.mxu0 %v3209_v52  ;;  %v3254_v52 = vld [vmem:[%s3962_s17 + $0x70] sm:$0xff]  }
 0xb8e   : > { %2076 = vmatprep.subr.bf16.mxu0 %v3217_v54  ;;  %v3256_v54 = vld [vmem:[%s3962_s17 + $0x30] sm:$0xff]  }
 0xb91   : > { %2077 = vmatpush1.bf16.msra.mxu0 %v3215_v56  ;;  %v3258_v56 = vld [vmem:[%s3962_s17 + $0x78] sm:$0xff]  }
 0xb92   : > { %2078 = vmatprep.subr.bf16.mxu0 %v3223_v58  ;;  %v3260_v58 = vld [vmem:[%s3962_s17 + $0x38] sm:$0xff]  }
 0xb95   : > { %2079 = vmatpush1.bf16.msra.mxu0 %v3221_v62  ;;  %v706_v62 = vld [vmem:[%s3964_s27 + $0x30] sm:$0xff] }
 0xb96   : > { %2080 = vmatprep.subr.bf16.mxu0 %v3229_v0  ;;  %v707_v0 = vld [vmem:[%s3964_s27 + $0x38] sm:$0xff] }
 0xb99   : > { %2081 = vmatpush1.bf16.msra.mxu0 %v3227_v2  ;;  %v1858_v2 = vrot.slane %v706_v62, %v4238_v14 }
 0xb9a   : > { %2905 = vmatprep.subr.bf16.mxu0 %v3231_v4  ;;  %v1862_v4 = vrot.slane %v707_v0, %v4238_v14 }
 0xc0f   : > { %v1813_v28 = vpop.xlane.xlu0 %1812 }
 0xc10   : > { %v1816_v30 = vmul.f32 0.0078125, %v1813_v28  ;;  %v3234_v28 = vld [vmem:[%s3962_s17 + $0x48] sm:$0xff]  }
 0xc11   : > { %v1815_v31 = vpop.xlane.xlu1 %1814 }
 0xc12   : > { %v4252_v32 = vsub.f32 %v1810_v18, %v1816_v30  ;;  %v1817_v33 = vmul.f32 0.0078125, %v1815_v31  ;;  %v3236_v30 = vld [vmem:[%s3962_s17 + $0x8] sm:$0xff]  }
 0xc13   : > { %v3237_v31 = vld [vmem:[%s3962_s17 + $0x88] sm:$0xff]  }
 0xc14   : > { %v4254_v34 = vsub.f32 %v1811_v13, %v1817_v33  ;;  %v1820_v35 = vmul.f32 %v4252_v32, %v4252_v32  ;;  %v3239_v33 = vld [vmem:[%s3962_s17 + $0xd0] sm:$0xff]  }
 0xc16   : > { %1822 = vadd.xlane.f32.xlu0 %v1820_v35  ;;  %v1821_v36 = vmul.f32 %v4254_v34, %v4254_v34  ;;  %v3241_v35 = vld [vmem:[%s3962_s17 + $0x90] sm:$0xff]  }
 0xc18   : > { %1824 = vadd.xlane.f32.xlu1 %v1821_v36  ;;  %v3242_v36 = vld [vmem:[%s3962_s17 + $0x58] sm:$0xff]  }
 0xca3   : > { %v1823_v60 = vpop.xlane.xlu0 %1822 }
 0xca4   : > { %v1826_v8 = vmul.f32 0.0078125, %v1823_v60 }
 0xca5   : > { %v1825_v61 = vpop.xlane.xlu1 %1824 }
 0xca6   : > { %v1828_v10 = vadd.f32 1e-05, %v1826_v8  ;;  %v1827_v11 = vmul.f32 0.0078125, %v1825_v61 }
 0xca8   : > { %3282 = vrsqrt.f32 %v1828_v10  ;;  %v1829_v12 = vadd.f32 1e-05, %v1827_v11 }
 0xcaa   : > { %3284 = vrsqrt.f32 %v1829_v12 }
 0xcb2   : > { %v3283_v17 = vpop.eup %3282 }
 0xcb3   : > { %v1832_v18 = vmul.f32 %v3283_v17, %v4252_v32  ;;  %v3238_v32 = vld [vmem:[%s3962_s17 + $0x50] sm:$0xff]  }
 0xcb4   : > { %v3285_v13 = vpop.eup %3284 }
 0xcb5   : > { %v1833_v20 = vmul.f32 %v3285_v13, %v4254_v34  ;;  %v1838_v22 = vmul.f32 %v1837_v16, %v1832_v18  ;;  %v3240_v34 = vld [vmem:[%s3962_s17 + $0x10] sm:$0xff]  }
 0xcb7   : > { %v1839_v23 = vmul.f32 %v1837_v16, %v1833_v20  ;;  %v4294_v7 = vadd.f32 %v1843_v19, %v1838_v22 }
 0xcb9   : > { %v4296_v24 = vadd.f32 %v1843_v19, %v1839_v23 }
 0xcbb   : > { %v1846_v27 = vpack.c.bf16 %v4296_v24, %v4294_v7 }
 0xcbd   : > { %2056 = vmatmul.mubr.bf16.vlgmr.msra.gmra.mrb[40].mxu1 %v1846_v27  ;;  %2099 = vmatmul.mubr.bf16.vlgmr.msra.gmra.mrb[16].mxu0 %v1846_v27 }
 0xcbe   : > { %2884 = vmatpush3.bf16.msra.mxu1 %v3232_v25  ;;  %2906 = vmatpush3.bf16.msra.mxu0 %v3233_v29 }
 0xcbf   : > { %2885 = vmatprep.subr.bf16.mxu1 %v3234_v28  ;;  %2907 = vmatprep.subr.bf16.mxu0 %v3235_v46 }
 0xcc2   : > { %2886 = vmatpush3.bf16.msra.mxu1 %v3236_v30  ;;  %2908 = vmatpush3.bf16.msra.mxu0 %v3237_v31 }
 0xcc3   : > { %2887 = vmatprep.subr.bf16.mxu1 %v3238_v32  ;;  %2909 = vmatprep.subr.bf16.mxu0 %v3239_v33 }
 0xcc6   : > { %2888 = vmatpush3.bf16.msra.mxu1 %v3240_v34  ;;  %2910 = vmatpush3.bf16.msra.mxu0 %v3241_v35 }
 0xcc7   : > { %2889 = vmatprep.subr.bf16.mxu1 %v3242_v36  ;;  %2911 = vmatprep.subr.bf16.mxu0 %v3243_v37 }
 0xcca   : > { %2890 = vmatpush3.bf16.msra.mxu1 %v3244_v38  ;;  %2912 = vmatpush3.bf16.msra.mxu0 %v3245_v41 }
 0xccb   : > { %2891 = vmatprep.subr.bf16.mxu1 %v3246_v42  ;;  %2913 = vmatprep.subr.bf16.mxu0 %v3247_v43  ;;  %v2124_v42 = vrot.slane %v4153_v15, %v1514_v9 }
 0xcce   : > { %2892 = vmatpush3.bf16.msra.mxu1 %v3248_v45  ;;  %2914 = vmatpush3.bf16.msra.mxu0 %v3249_v47 }
 0xccf   : > { %2893 = vmatprep.subr.bf16.mxu1 %v3250_v48  ;;  %2915 = vmatprep.subr.bf16.mxu0 %v3251_v39 }
 0xcd2   : > { %2894 = vmatpush3.bf16.msra.mxu1 %v3252_v50  ;;  %2916 = vmatpush3.bf16.msra.mxu0 %v3253_v51 }
 0xcd3   : > { %2895 = vmatprep.subr.bf16.mxu1 %v3254_v52  ;;  %2917 = vmatprep.subr.bf16.mxu0 %v3255_v53 }
 0xcd6   : > { %2896 = vmatpush3.bf16.msra.mxu1 %v3256_v54  ;;  %2918 = vmatpush3.bf16.msra.mxu0 %v3257_v55 }
 0xcd7   : > { %2897 = vmatprep.subr.bf16.mxu1 %v3258_v56  ;;  %2919 = vmatprep.subr.bf16.mxu0 %v3259_v57 }
 0xcda   : > { %2898 = vmatpush3.bf16.msra.mxu1 %v3260_v58  ;;  %2920 = vmatpush3.bf16.msra.mxu0 %v3261_v59 }
 0xd90   : > { %v2057_v60 = vpop.f32.mrb[40].mxu1  ;;  %v2100_v8 = vpop.f32.mrb[16].mxu0 }
 0xd91   : > { %v2058_v61 = vadd.f32 %v2057_v60, %v1850_v1  ;;  %v2101_v10 = vadd.f32 %v2100_v8, %v1858_v2  ;;  %v2059_v11 = vpop.f32.mrb[41].mxu1  ;;  %v2102_v12 = vpop.f32.mrb[17].mxu0 }
 0xd92   : > { %v2060_v16 = vadd.f32 %v2059_v11, %v1854_v3  ;;  %v2103_v17 = vadd.f32 %v2102_v12, %v1862_v4  ;;  %v2061_v18 = vpop.f32.mrb[42].mxu1  ;;  %v2104_v13 = vpop.f32.mrb[18].mxu0 }
 0xd93   : > { %v2062_v19 = vadd.f32 %v2061_v18, %v1850_v1  ;;  %v2105_v20 = vadd.f32 %v2104_v13, %v1858_v2  ;;  %v2063_v22 = vpop.f32.mrb[43].mxu1  ;;  %v2106_v23 = vpop.f32.mrb[19].mxu0  ;;  %v2109_v27 = vmax.f32 %v2058_v61, 0.0  ;;  %v2111_v28 = vmax.f32 %v2101_v10, 0.0 }
 0xd94   : > { %v2064_v25 = vadd.f32 %v2063_v22, %v1854_v3  ;;  %v2107_v29 = vadd.f32 %v2106_v23, %v1862_v4  ;;  %v2110_v30 = vmax.f32 %v2060_v16, 0.0  ;;  %v2112_v31 = vmax.f32 %v2103_v17, 0.0 }
 0xd95   : > { %v2113_v46 = vmax.f32 %v2062_v19, 0.0  ;;  %v2115_v14 = vmax.f32 %v2105_v20, 0.0  ;;  %v2432_v17 = vrot.slane %v4153_v15, %v1506_v6 }
 0xd96   : > { %v2114_v32 = vmax.f32 %v2064_v25, 0.0  ;;  %v2116_v33 = vmax.f32 %v2107_v29, 0.0 }
 0xd97   : > { %v2117_v34 = vpack.c.bf16 %v2113_v46, %v2109_v27  ;;  %v2119_v35 = vpack.c.bf16 %v2115_v14, %v2111_v28 }
 0xd98   : > { %v2118_v36 = vpack.c.bf16 %v2114_v32, %v2110_v30  ;;  %v2120_v37 = vpack.c.bf16 %v2116_v33, %v2112_v31 }
 0xd9a   : > { %2349 = vmatprep.mubr.bf16.mxu1 %v2118_v36  ;;  %2390 = vmatprep.mubr.bf16.mxu0 %v2120_v37 }
 0xd9b   : > { %2350 = vmatmul.mubr.bf16.vlgmr.msra.gmra.mrb[44].mxu1 %v2117_v34  ;;  %2391 = vmatmul.mubr.bf16.vlgmr.msra.gmra.mrb[20].mxu0 %v2119_v35 }
 0xe6e   : > { %v2899_v38 = vpop.f32.mrb[44].mxu1  ;;  %v2921_v41 = vpop.f32.mrb[20].mxu0 }
 0xe6f   : > { %v2900_v43 = vpop.f32.mrb[45].mxu1  ;;  %v2922_v45 = vpop.f32.mrb[21].mxu0 }
 0xe70   : > { %v2901_v47 = vadd.f32 %v2900_v43, %v2899_v38  ;;  %v2923_v48 = vadd.f32 %v2922_v45, %v2921_v41  ;;  %v2902_v39 = vpop.f32.mrb[46].mxu1  ;;  %v2924_v50 = vpop.f32.mrb[22].mxu0 }
 0xe71   : > { %v2903_v51 = vpop.f32.mrb[47].mxu1  ;;  %v2925_v52 = vpop.f32.mrb[23].mxu0 }
 0xe72   : > { %v2352_v53 = vadd.f32 %v2901_v47, %v2124_v42  ;;  %v2904_v54 = vadd.f32 %v2903_v51, %v2902_v39  ;;  %v2926_v55 = vadd.f32 %v2925_v52, %v2924_v50 }
 0xe74   : > { %v2393_v56 = vadd.f32 %v2923_v48, %v2352_v53  ;;  %v2355_v57 = vadd.f32 %v2904_v54, %v2124_v42 }
 0xe76   : > { %v2396_v58 = vadd.f32 %v2926_v55, %v2355_v57  ;;  %v2399_v59 = vadd.f32 %v2393_v56, %v4294_v7 }
 0xe78   : > { %2401 = vadd.xlane.f32.xlu0 %v2399_v59  ;;  %v2400_v62 = vadd.f32 %v2396_v58, %v4296_v24  ;;  %v2426_v24 = vrot.slane %v4153_v15, %v1282_v40 }
 0xe7a   : > { %2403 = vadd.xlane.f32.xlu1 %v2400_v62 }
 0xf05   : > { %v2402_v9 = vpop.xlane.xlu0 %2401 }
 0xf06   : > { %v2405_v63 = vmul.f32 0.0078125, %v2402_v9 }
 0xf07   : > { %v2404_v0 = vpop.xlane.xlu1 %2403 }
 0xf08   : > { %v2407_v1 = vsub.f32 %v2399_v59, %v2405_v63  ;;  %v2406_v2 = vmul.f32 0.0078125, %v2404_v0 }
 0xf0a   : > { %v2408_v3 = vsub.f32 %v2400_v62, %v2406_v2  ;;  %v2409_v4 = vmul.f32 %v2407_v1, %v2407_v1 }
 0xf0c   : > { %2411 = vadd.xlane.f32.xlu0 %v2409_v4  ;;  %v2410_v60 = vmul.f32 %v2408_v3, %v2408_v3 }
 0xf0e   : > { %2413 = vadd.xlane.f32.xlu1 %v2410_v60 }
 0xf99   : > { %v2412_v8 = vpop.xlane.xlu0 %2411 }
 0xf9a   : > { %v2415_v61 = vmul.f32 0.0078125, %v2412_v8 }
 0xf9b   : > { %v2414_v10 = vpop.xlane.xlu1 %2413 }
 0xf9c   : > { %v2417_v11 = vadd.f32 1e-05, %v2415_v61  ;;  %v2416_v12 = vmul.f32 0.0078125, %v2414_v10 }
 0xf9e   : > { %3286 = vrsqrt.f32 %v2417_v11  ;;  %v2418_v7 = vadd.f32 1e-05, %v2416_v12 }
 0xfa0   : > { %3288 = vrsqrt.f32 %v2418_v7 }
 0xfa8   : > { %v3287_v16 = vpop.eup %3286 }
 0xfa9   : > { %v2421_v18 = vmul.f32 %v3287_v16, %v2407_v1 }
 0xfaa   : > { %v3289_v13 = vpop.eup %3288 }
 0xfab   : > { %v2427_v19 = vmul.f32 %v2426_v24, %v2421_v18  ;;  %v2422_v20 = vmul.f32 %v3289_v13, %v2408_v3  ;;  %2440 = sbr.rel (%p2818_p3) target bundleno = 4018 (0xfb2), region = 76 }
 0xfad   : > { %v2433_v22 = vadd.f32 %v2432_v17, %v2427_v19  ;;  %v2428_v23 = vmul.f32 %v2426_v24, %v2422_v20 }
 0xfaf   : > { %2435 = vst [vmem:[#allocation2] sm:$0xff] %v2433_v22  ;;  %v2434_v25 = vadd.f32 %v2432_v17, %v2428_v23  ;;  %2441 = vst [vmem:[#allocation13] sm:$0xff] (!%p2818_p3), %v2433_v22 }
 0xfb1   : > { %2436 = vst [vmem:[#allocation2 + $0x8] sm:$0xff] %v2434_v25  ;;  %2442 = vst [vmem:[#allocation13 + $0x8] sm:$0xff] (!%p2818_p3), %v2434_v25 }
 0xfb2 PF: > { %p3108_p6 = scmp.eq.s32.totalorder %s3709_s11, 1  ;;  %s3630_s30 = smov [#allocation14]  }
 0xfb3   : > { %s2472_s13 = sshll.u32 %s3630_s30, 4  ;;  %s2473_s13 = int_to_ptr.vmem [resolvable:$true] %s2472_s13 }
 0xfb4   : > { %s3466_s2 = scalar_lea.vmem %s2473_s13, 256  ;;  %p3473_p1 = scmp.lt.s32.totalorder %s2473_s13, %s2473_s13 }
 0xfb5   : > { %p3467_p4 = scmp.ne.s32.totalorder %s2473_s13, %s3466_s2  ;;  %p3474_p5 = scmp.lt.s32.totalorder %s3466_s2, %s3466_s2 }
 0xfb7   : > { %p3468_p8 = pnand %p3467_p4, %p3108_p6  ;;  %p3475_p12 = por %p3474_p5, %p3473_p1 }
 0xfb9   : > { %p3469_p13 = pneg %p3468_p8 }
 0xfbb   : > { %p3476_p11 = pnand %p3475_p12, %p3469_p13 }
 0xfbd   : > { %3479 = shalt.err (!%p3476_p11)
}
 0xfbe   : > { %s3480_s6 = scalar_lea.hbm %s4455_s7, 256 }
 0xfbf   : > { %p3481_p0 = scmp.ne.s32.totalorder %s4455_s7, %s3480_s6  ;;  %p3486_p2 = scmp.lt.u32.totalorder %s3480_s6, %s4455_s7 }
 0xfc1   : > { %p3482_p7 = pnand %p3481_p0, %p3108_p6 }
 0xfc3   : > { %p3483_p9 = pneg %p3482_p7 }
 0xfc5   : > { %p3488_p10 = pnand %p3486_p2, %p3483_p9 }
 0xfc7   : > { %3491 = shalt.err (!%p3488_p10)
}
 0xfc8   : > { %s3631_s3 = smov 128   ;;  %s3632_s4 = smov 8  }
 0xfc9   : > { %3074 = dma.vmem_to_hbm [thread:$0]  (%p3108_p6), %s2473_s13, 256, %s4455_s7, [#allocation15], %s3631_s3, %s3631_s3, %s3632_s4  }
 0xfca   : > { %s3633_s8 = smov [#allocation13]   ;;  %s3634_s25 = smov [#allocation16]  }
 0xfcb   : > { %s2456_s14 = sshll.u32 %s3633_s8, 4  ;;  %s2488_s23 = sshll.u32 %s3634_s25, 4  ;;  %s2457_s14 = int_to_ptr.vmem [resolvable:$true] %s2456_s14  ;;  %s2489_s23 = int_to_ptr.vmem [resolvable:$true] %s2488_s23 }
 0xfcc   : > { %s3492_s12 = scalar_lea.vmem %s2457_s14, 256  ;;  %p3499_p13 = scmp.lt.s32.totalorder %s2457_s14, %s2457_s14 }
 0xfcd   : > { %p3493_p3 = scmp.ne.s32.totalorder %s2457_s14, %s3492_s12  ;;  %p3500_p1 = scmp.lt.s32.totalorder %s3492_s12, %s3492_s12 }
 0xfcf   : > { %p3494_p4 = pnand %p3493_p3, %p3108_p6  ;;  %p3501_p5 = por %p3500_p1, %p3499_p13 }
 0xfd1   : > { %p3495_p8 = pneg %p3494_p4 }
 0xfd3   : > { %p3502_p12 = pnand %p3501_p5, %p3495_p8 }
 0xfd5   : > { %3505 = shalt.err (!%p3502_p12)
}
 0xfd6   : > { %s4503_s27 = sld [smem:[#allocation27_spill]] }
 0xfdc   : > { %s4504_s2 = smov %s4503_s27  ;;  %s3506_s30 = scalar_lea.hbm %s4503_s27, 256 }
 0xfdd   : > { %p3507_p11 = scmp.ne.s32.totalorder %s4504_s2, %s3506_s30  ;;  %p3512_p9 = scmp.lt.u32.totalorder %s3506_s30, %s4504_s2 }
 0xfdf   : > { %p3508_p0 = pnand %p3507_p11, %p3108_p6 }
 0xfe1   : > { %p3509_p7 = pneg %p3508_p0 }
 0xfe3   : > { %p3514_p2 = pnand %p3512_p9, %p3509_p7 }
 0xfe5   : > { %3517 = shalt.err (!%p3514_p2)
}
 0xfe6   : > { %3072 = dma.vmem_to_hbm [thread:$0]  (%p3108_p6), %s2457_s14, 256, %s4504_s2, [#allocation6], %s3631_s3, %s3631_s3, %s3632_s4  }
 0xfe7   : > { %s3518_s15 = scalar_lea.vmem %s2489_s23, 256  ;;  %p3525_p8 = scmp.lt.s32.totalorder %s2489_s23, %s2489_s23 }
 0xfe8   : > { %p3519_p10 = scmp.ne.s32.totalorder %s2489_s23, %s3518_s15  ;;  %p3526_p13 = scmp.lt.s32.totalorder %s3518_s15, %s3518_s15 }
 0xfea   : > { %p3520_p3 = pnand %p3519_p10, %p3108_p6  ;;  %p3527_p1 = por %p3526_p13, %p3525_p8 }
 0xfec   : > { %p3521_p4 = pneg %p3520_p3 }
 0xfee   : > { %p3528_p5 = pnand %p3527_p1, %p3521_p4 }
 0xff0   : > { %3531 = shalt.err (!%p3528_p5)
}
 0xff1   : > { %s4505_s0 = sld [smem:[#allocation28_spill]] }
 0xff7   : > { %s3532_s8 = scalar_lea.hbm %s4505_s0, 256 }
 0xff8   : > { %p3533_p12 = scmp.ne.s32.totalorder %s4505_s0, %s3532_s8  ;;  %p3538_p7 = scmp.lt.u32.totalorder %s3532_s8, %s4505_s0 }
 0xffa   : > { %p3534_p11 = pnand %p3533_p12, %p3108_p6 }
 0xffc   : > { %p3535_p0 = pneg %p3534_p11 }
 0xffe   : > { %p3540_p9 = pnand %p3538_p7, %p3535_p0 }
0x1000   : > { %3543 = shalt.err (!%p3540_p9)
}
0x1001   : > { %3076 = dma.vmem_to_hbm [thread:$0]  (%p3108_p6), %s2489_s23, 256, %s4505_s0, [#allocation15], %s3631_s3, %s3631_s3, %s3632_s4  }
0x1002   : > { %3581 = dma.done.wait (%p3108_p6), [#allocation6], 256  }
0x1003   : > { %3583 = vsyncadd (%p3108_p6), [#allocation6], 4294967040 }
0x1004   : > { %3585 = dma.done.wait (%p3108_p6), [#allocation15], 512  }
0x1005   : > { %3587 = vsyncadd (%p3108_p6), [#allocation15], 4294966784 }
0x1006 PF: > { %s23_s10 = sadd.s32 1, %s3610_s10   ;;  %s4506_s3 = sld [smem:[#allocation22_spill]] }
0x1007   : > { %p20_p2 = scmp.ge.s32.totalorder %s23_s10, 4   ;;  %s4507_s27 = smov %s3594_s28 }
0x1008   : > { %s4508_s28 = smov %s3598_s29  ;;  %s4509_s29 = smov %s3783_s21 }
0x1009   : > { %s4510_s30 = smov %s3606_s9  ;;  %22 = sbr.rel (!%p20_p2) target bundleno = 13 (0xd), region = 150 }
0x100c   : > { %s4511_s9 = smov %s4506_s3 }
0x1010   :  { %2512 = vsyncpa [#allocation5], 1 }
0x1011   :  { %2514 = vsyncpa [#allocation5 + $0x1], 1 }
0x1012   :  { %2515 = vsyncpa [#allocation8], 1 }
0x1013   :  { %2516 = vsyncpa [#allocation6], 1 }
0x1014   :  { %2518 = vsyncpa [#allocation6 + $0x1], 1 }
0x1015   :  { %2519 = vsyncpa [#allocation15], 1 }

</bundles_post_ra>
